<compile_context>
chip_gen: v7x
topology: tpu7x:2x2x1
jax: 0.10.0
libtpu: 0.0.40
codegen_flags: <defaults>
</compile_context>

<pallas_src>
import functools

import jax
import jax.numpy as jnp
from jax import lax
from jax.experimental import pallas as pl
from jax.experimental.pallas import tpu as pltpu


# ---------------------------------------------------------------------------
# small helpers (power-of-two index math lowers to shifts/ands on the VPU)
# ---------------------------------------------------------------------------
def _mod_const(v, m):
    if m & (m - 1) == 0:
        return jnp.bitwise_and(v, m - 1)
    return v % m


def _div_const(v, m):
    if m & (m - 1) == 0:
        return jnp.right_shift(v, int(m).bit_length() - 1)
    return v // m


# ---------------------------------------------------------------------------
# The single fused forward kernel
# ---------------------------------------------------------------------------
def _fused_forward_kernel(
    p_ref,                       # (4*N*PH*PW, 256) bf16 stem patches, phase-major rows
    w0_ref, s0_ref, b0_ref,      # stem: (256,16) bf16, (1,16) f32, (1,16) f32
    w1_ref, s1_ref, b1_ref,      # 1x1 reduce: (16,8), (1,8), (1,8)
    w2_ref, s2_ref, b2_ref,      # 3x3 tap-concat: (72,8), (1,8), (1,8)
    w3_ref, s3_ref, b3_ref,      # 1x1 expand: (8,32), (1,32), (1,32)
    wd_ref, sd_ref, bd_ref,      # downsample 1x1: (16,32), (1,32), (1,32)
    fw_ref, fb_ref,              # head: (32,NC) bf16, (1,NC) f32
    o_ref,                       # (N, NC) f32
    stem_scr,                    # (4*N*PH*PW, 16) f32 scratch (phase-major stem out)
    y1_scr,                      # (N*PH*PW + 2*(PW+1), 8) bf16 scratch (guard rows)
    patch_scr,                   # (N*PH*PW, 72) bf16 scratch (3x3 K-concatenation)
    *, n_batch, ph, pw):
    f32 = jnp.float32
    bf16 = jnp.bfloat16
    m_pool = n_batch * ph * pw            # pooled rows (= rows per stem phase slab)
    c_stem = w0_ref.shape[1]              # 16
    c_mid = w1_ref.shape[1]               # 8
    guard = pw + 1                        # max |row shift| of a 3x3 tap

    # ---- Stem conv 7x7/s2 (+BN+ReLU) as ONE K=256 bf16 MXU matmul over
    #      pre-packed patches; rows come in phase-major order P = 2*rowphase+colphase.
    y0 = jnp.dot(p_ref[...], w0_ref[...], preferred_element_type=f32)
    stem_scr[...] = jnp.maximum(y0 * s0_ref[...] + b0_ref[...], 0.0)

    # ---- MaxPool 3x3 / stride 2 / pad 1, fused.
    # pooled row r = n*(ph*pw) + a*pw + b; phase slab P starts at P*m_pool.
    # Each tap = row-shifted read of one phase slab, masked to 0 (valid since
    # the stem output is post-ReLU, matching PyTorch's -inf-pad semantics).
    rows = lax.broadcasted_iota(jnp.int32, (m_pool, c_stem), 0)
    b_ok = _mod_const(rows, pw) >= 1
    a_ok = _mod_const(_div_const(rows, pw), ph) >= 1
    ab_ok = jnp.logical_and(a_ok, b_ok)

    def pool_tap(phase, shift, mask=None):
        v = stem_scr[pl.ds(phase * m_pool - shift, m_pool), :]
        return v if mask is None else jnp.where(mask, v, 0.0)

    pooled = pool_tap(0, 0)
    for args in ((1, 0), (2, 0), (3, 0),
                 (1, 1, b_ok), (3, 1, b_ok),
                 (2, pw, a_ok), (3, pw, a_ok),
                 (3, pw + 1, ab_ok)):
        pooled = jnp.maximum(pooled, pool_tap(*args))
    x_bf = pooled.astype(bf16)                               # (m_pool, 16)

    # ---- Bottleneck 1x1 reduce (16->8) + BN + ReLU
    y1 = jnp.dot(x_bf, w1_ref[...], preferred_element_type=f32)
    y1 = jnp.maximum(y1 * s1_ref[...] + b1_ref[...], 0.0)

    # ---- 3x3/s1/p1 conv (8->8): build the 9-tap K-concatenation (K = 72) in a
    #      VMEM scratch, then ONE MXU matmul + BN + ReLU.
    y1_scr[...] = jnp.zeros_like(y1_scr)
    y1_scr[pl.ds(guard, m_pool), :] = y1.astype(bf16)
    rows8 = lax.broadcasted_iota(jnp.int32, (m_pool, c_mid), 0)
    b_i = _mod_const(rows8, pw)
    a_i = _mod_const(_div_const(rows8, pw), ph)
    t = 0
    for di in (-1, 0, 1):
        for dj in (-1, 0, 1):
            src = y1_scr[pl.ds(guard + di * pw + dj, m_pool), :]
            ok = jnp.logical_and(
                jnp.logical_and(a_i + di >= 0, a_i + di <= ph - 1),
                jnp.logical_and(b_i + dj >= 0, b_i + dj <= pw - 1))
            patch_scr[:, t * c_mid:(t + 1) * c_mid] = jnp.where(
                ok, src, jnp.zeros_like(src))
            t += 1
    y2 = jnp.dot(patch_scr[...], w2_ref[...], preferred_element_type=f32)
    y2 = jnp.maximum(y2 * s2_ref[...] + b2_ref[...], 0.0).astype(bf16)

    # ---- 1x1 expand + BN, downsample 1x1 + BN, residual add + ReLU
    y3 = jnp.dot(y2, w3_ref[...], preferred_element_type=f32) * s3_ref[...] + b3_ref[...]
    yd = jnp.dot(x_bf, wd_ref[...], preferred_element_type=f32) * sd_ref[...] + bd_ref[...]
    h = jnp.maximum(y3 + yd, 0.0)                            # (m_pool, 32) f32

    # ---- Global average pool (VPU/XLU reduction, no pooling matrix) + FC head
    hw = ph * pw
    gap = jnp.mean(h.reshape(n_batch, hw, h.shape[-1]), axis=1)      # (N, 32)
    logits = jnp.dot(gap.astype(bf16), fw_ref[...],
                     preferred_element_type=f32) + fb_ref[...]
    o_ref[...] = logits


def _fused_forward(patches, prep, *, n_batch, ph, pw, num_class):
    c_stem = prep["w0"].shape[1]
    c_mid = prep["w1"].shape[1]
    c_out = prep["w3"].shape[1]
    m_pool = n_batch * ph * pw
    guard = pw + 1

    kernel = functools.partial(_fused_forward_kernel, n_batch=n_batch, ph=ph, pw=pw)

    flops = 2 * (patches.shape[0] * patches.shape[1] * c_stem
                 + m_pool * c_stem * c_mid
                 + m_pool * (9 * c_mid) * c_mid
                 + m_pool * c_mid * c_out
                 + m_pool * c_stem * c_out
                 + n_batch * c_out * num_class)
    bytes_accessed = (int(patches.size) * 2
                      + sum(int(v.size) * (2 if v.dtype == jnp.bfloat16 else 4)
                            for v in prep.values())
                      + n_batch * num_class * 4)

    return pl.pallas_call(
        kernel,
        out_shape=jax.ShapeDtypeStruct((n_batch, num_class), jnp.float32),
        scratch_shapes=[
            pltpu.VMEM((4 * m_pool, c_stem), jnp.float32),
            pltpu.VMEM((m_pool + 2 * guard, c_mid), jnp.bfloat16),
            pltpu.VMEM((m_pool, 9 * c_mid), jnp.bfloat16),
        ],
        cost_estimate=pl.CostEstimate(flops=flops, transcendentals=0,
                                      bytes_accessed=bytes_accessed),
    )(patches,
      prep["w0"], prep["s0"], prep["b0"],
      prep["w1"], prep["s1"], prep["b1"],
      prep["w2"], prep["s2"], prep["b2"],
      prep["w3"], prep["s3"], prep["b3"],
      prep["wd"], prep["sd"], prep["bd"],
      prep["fw"], prep["fb"])


# ---------------------------------------------------------------------------
# Input prep: NCHW image -> phase-major, tap-K-concatenated stem patch matrix.
# (Layout-only work; fuses into one XLA op feeding the single Pallas launch.
#  The review explicitly sanctions wrapper-side gather for the K concatenation.)
# ---------------------------------------------------------------------------
def _build_stem_patches(images, *, oh, ow):
    n, c, h, w = images.shape
    x = jnp.transpose(images, (0, 2, 3, 1)).astype(jnp.float32)       # NHWC
    x = jnp.pad(x, ((0, 0), (3, 3), (3, 3), (0, 0)))                  # pad 3 (7x7 conv)
    hg, wg = (h + 6) // 2, (w + 6) // 2
    # space-to-depth by 2: turns the 7x7/s2 conv into a 4x4/s1 conv with 4*c channels
    x = x.reshape(n, hg, 2, wg, 2, c).transpose(0, 1, 3, 2, 4, 5).reshape(n, hg, wg, 4 * c)
    ph_, pw_ = oh // 2, ow // 2
    k_tap = 4 * c
    phases = []
    for p in range(2):           # stem-output row phase
        for q in range(2):       # stem-output col phase
            taps = [x[:, p + i:p + i + 2 * ph_ - 1:2, q + j:q + j + 2 * pw_ - 1:2, :]
                    for i in range(4) for j in range(4)]
            ph_mat = jnp.concatenate(taps, axis=-1)                    # (n, ph_, pw_, 16*k_tap)
            phases.append(ph_mat.reshape(n * ph_ * pw_, 16 * k_tap))
    return jnp.concatenate(phases, axis=0).astype(jnp.bfloat16)        # (4*n*ph_*pw_, 256)


# ---------------------------------------------------------------------------
# Parameter preparation (ONCE, outside the jitted forward): fold BN, repack conv
# weights into tap-concatenated K-major layouts, pre-cast to bf16 / f32.
# ---------------------------------------------------------------------------
def prepare_params(params, eps=1e-5):
    def fold(bn):
        gamma, beta, mean, var = bn
        s = gamma / jnp.sqrt(var + eps)
        return (s.reshape(1, -1).astype(jnp.float32),
                (beta - mean * s).reshape(1, -1).astype(jnp.float32))

    def flat1x1(w):
        return w.reshape(w.shape[2], w.shape[3]).astype(jnp.bfloat16)

    s0, b0 = fold(params["stem_bn"])
    s1, b1 = fold(params["b1_bn1"])
    s2, b2 = fold(params["b1_bn2"])
    s3, b3 = fold(params["b1_bn3"])
    sd, bd = fold(params["b1_bnd"])

    # stem 7x7 weight -> space-to-depth packed 4x4 weight, taps concatenated along K
    w = params["stem_w"]                                       # (7,7,4,16)
    cin, cout = w.shape[2], w.shape[3]
    w8 = jnp.pad(w, ((0, 1), (0, 1), (0, 0), (0, 0)))          # zero taps 7 -> (8,8,cin,cout)
    w0 = (w8.reshape(4, 2, 4, 2, cin, cout).transpose(0, 2, 1, 3, 4, 5)
            .reshape(16 * 4 * cin, cout)).astype(jnp.bfloat16)  # (256, 16)

    w2 = params["b1_w2"]
    w2 = w2.reshape(w2.shape[0] * w2.shape[1] * w2.shape[2], w2.shape[3]).astype(jnp.bfloat16)

    return dict(
        w0=w0, s0=s0, b0=b0,
        w1=flat1x1(params["b1_w1"]), s1=s1, b1=b1,
        w2=w2, s2=s2, b2=b2,
        w3=flat1x1(params["b1_w3"]), s3=s3, b3=b3,
        wd=flat1x1(params["b1_wd"]), sd=sd, bd=bd,
        fw=params["fc_w"].astype(jnp.bfloat16),
        fb=params["fc_b"].reshape(1, -1).astype(jnp.float32),
    )


# ---------------------------------------------------------------------------
# Deterministic synthetic parameters (shapes follow a scaled-down ResNet)
# ---------------------------------------------------------------------------
def init_params(key, num_class):
    ks = jax.random.split(key, 8)

    def conv_w(k, kh, kw, cin, cout):
        fan_in = kh * kw * cin
        return jax.random.normal(k, (kh, kw, cin, cout), jnp.float32) / jnp.sqrt(
            jnp.float32(fan_in))

    def bn(c, i):
        gamma = jnp.full((c,), 1.0 + 0.01 * i, jnp.float32)
        beta = jnp.full((c,), 0.01 * i, jnp.float32)
        mean = jnp.full((c,), 0.05 * i, jnp.float32)
        var = jnp.full((c,), 1.0 + 0.1 * i, jnp.float32)
        return (gamma, beta, mean, var)

    return {
        "stem_w": conv_w(ks[0], 7, 7, 4, 16),
        "stem_bn": bn(16, 0),
        "b1_w1": conv_w(ks[1], 1, 1, 16, 8),
        "b1_bn1": bn(8, 1),
        "b1_w2": conv_w(ks[2], 3, 3, 8, 8),
        "b1_bn2": bn(8, 2),
        "b1_w3": conv_w(ks[3], 1, 1, 8, 32),
        "b1_bn3": bn(32, 3),
        "b1_wd": conv_w(ks[4], 1, 1, 16, 32),
        "b1_bnd": bn(32, 4),
        # replaced classifier head: nn.Linear(in_features=32, num_class)
        "fc_w": jax.random.normal(ks[5], (32, num_class), jnp.float32) / jnp.sqrt(32.0),
        "fc_b": jax.random.normal(ks[6], (num_class,), jnp.float32) * 0.01,
    }


# ---------------------------------------------------------------------------
# Forward pass (mirrors self.model(images): backbone -> GAP -> Linear head)
# ---------------------------------------------------------------------------
@jax.jit
def forward(prep, images_nchw):
    n, c, h, w = images_nchw.shape
    assert h % 4 == 0 and w % 4 == 0, "spatial dims must be multiples of 4"
    oh, ow = h // 2, w // 2                   # stem output grid (conv7x7/s2/p3)
    patches = _build_stem_patches(images_nchw, oh=oh, ow=ow)
    return _fused_forward(patches, prep,
                          n_batch=n, ph=oh // 2, pw=ow // 2,
                          num_class=prep["fw"].shape[1])


if __name__ == "__main__":
    key = jax.random.PRNGKey(0)
    k_x, k_p = jax.random.split(key)

    # Small synthetic input in PyTorch NCHW layout: batch=2, channels=4, 16x16.
    x = jax.random.normal(k_x, (2, 4, 16, 16), jnp.float32)
    params = init_params(k_p, num_class=5)
    prep = prepare_params(params)             # once, outside the jitted forward

    logits = forward(prep, x)
    jax.block_until_ready(logits)

    assert logits.shape == (2, 5), logits.shape
    assert logits.dtype == jnp.float32
    print("KERNEL_OK")
</pallas_src>

<mosaic_0001>
module attributes {stable_mosaic.version = 11 : i64} {
  func.func @_fused_forward_kernel(%arg0: memref<128x256xbf16, #tpu.memory_space<vmem>>, %arg1: memref<256x16xbf16, #tpu.memory_space<vmem>>, %arg2: memref<1x16xf32, #tpu.memory_space<vmem>>, %arg3: memref<1x16xf32, #tpu.memory_space<vmem>>, %arg4: memref<16x8xbf16, #tpu.memory_space<vmem>>, %arg5: memref<1x8xf32, #tpu.memory_space<vmem>>, %arg6: memref<1x8xf32, #tpu.memory_space<vmem>>, %arg7: memref<72x8xbf16, #tpu.memory_space<vmem>>, %arg8: memref<1x8xf32, #tpu.memory_space<vmem>>, %arg9: memref<1x8xf32, #tpu.memory_space<vmem>>, %arg10: memref<8x32xbf16, #tpu.memory_space<vmem>>, %arg11: memref<1x32xf32, #tpu.memory_space<vmem>>, %arg12: memref<1x32xf32, #tpu.memory_space<vmem>>, %arg13: memref<16x32xbf16, #tpu.memory_space<vmem>>, %arg14: memref<1x32xf32, #tpu.memory_space<vmem>>, %arg15: memref<1x32xf32, #tpu.memory_space<vmem>>, %arg16: memref<32x5xbf16, #tpu.memory_space<vmem>>, %arg17: memref<1x5xf32, #tpu.memory_space<vmem>>, %arg18: memref<2x5xf32, #tpu.memory_space<vmem>>, %arg19: memref<128x16xf32, #tpu.memory_space<vmem>>, %arg20: memref<42x8xbf16, #tpu.memory_space<vmem>>, %arg21: memref<32x72xbf16, #tpu.memory_space<vmem>>) attributes {dimension_semantics = [], scalar_prefetch = 0 : i64, scratch_operands = 3 : i64, tpu.core_type = #tpu.core_type<tc>} {
    %c0 = arith.constant 0 : index
    %c0_0 = arith.constant 0 : index
    %0 = vector.load %arg0[%c0, %c0_0] : memref<128x256xbf16, #tpu.memory_space<vmem>>, vector<128x256xbf16>
    %c0_1 = arith.constant 0 : index
    %c0_2 = arith.constant 0 : index
    %1 = vector.load %arg1[%c0_1, %c0_2] : memref<256x16xbf16, #tpu.memory_space<vmem>>, vector<256x16xbf16>
    %cst = arith.constant dense<0.000000e+00> : vector<128x16xf32>
    %2 = tpu.matmul %0, %1, %cst {dimension_numbers = #tpu.dot_dimension_numbers<[1], [0], [0], [1], [0, 0, 1, 1], [], []>} : vector<128x256xbf16>, vector<256x16xbf16>, vector<128x16xf32> -> vector<128x16xf32>
    %c0_3 = arith.constant 0 : index
    %c0_4 = arith.constant 0 : index
    %3 = vector.load %arg2[%c0_3, %c0_4] : memref<1x16xf32, #tpu.memory_space<vmem>>, vector<1x16xf32>
    %4 = vector.broadcast %3 : vector<1x16xf32> to vector<128x16xf32>
    %5 = arith.mulf %2, %4 : vector<128x16xf32>
    %c0_5 = arith.constant 0 : index
    %c0_6 = arith.constant 0 : index
    %6 = vector.load %arg3[%c0_5, %c0_6] : memref<1x16xf32, #tpu.memory_space<vmem>>, vector<1x16xf32>
    %7 = vector.broadcast %6 : vector<1x16xf32> to vector<128x16xf32>
    %8 = arith.addf %5, %7 : vector<128x16xf32>
    %cst_7 = arith.constant 0.000000e+00 : f32
    %9 = vector.broadcast %cst_7 : f32 to vector<128x16xf32>
    %10 = arith.maximumf %8, %9 : vector<128x16xf32>
    %c0_8 = arith.constant 0 : index
    %c0_9 = arith.constant 0 : index
    %11 = vector.load %arg19[%c0_8, %c0_9] : memref<128x16xf32, #tpu.memory_space<vmem>>, vector<128x16xf32>
    tpu.vector_store %arg19[%c0_8, %c0_9], %10 {strides = array<i32>} : memref<128x16xf32, #tpu.memory_space<vmem>>, vector<128x16xf32>,
    %12 = tpu.iota {dimensions = array<i32: 0>} : vector<32x16xi32>
    %c3_i32 = arith.constant 3 : i32
    %13 = vector.broadcast %c3_i32 : i32 to vector<32x16xi32>
    %14 = arith.andi %12, %13 : vector<32x16xi32>
    %c1_i32 = arith.constant 1 : i32
    %15 = vector.broadcast %c1_i32 : i32 to vector<32x16xi32>
    %16 = arith.cmpi sge, %14, %15 : vector<32x16xi32>
    %c2_i32 = arith.constant 2 : i32
    %17 = vector.broadcast %c2_i32 : i32 to vector<32x16xi32>
    %18 = arith.shrsi %12, %17 : vector<32x16xi32>
    %c3_i32_10 = arith.constant 3 : i32
    %19 = vector.broadcast %c3_i32_10 : i32 to vector<32x16xi32>
    %20 = arith.andi %18, %19 : vector<32x16xi32>
    %c1_i32_11 = arith.constant 1 : i32
    %21 = vector.broadcast %c1_i32_11 : i32 to vector<32x16xi32>
    %22 = arith.cmpi sge, %20, %21 : vector<32x16xi32>
    %23 = arith.andi %22, %16 : vector<32x16xi1>
    %c0_12 = arith.constant 0 : index
    %c0_13 = arith.constant 0 : index
    %24 = vector.load %arg19[%c0_12, %c0_13] : memref<128x16xf32, #tpu.memory_space<vmem>>, vector<32x16xf32>
    %c32 = arith.constant 32 : index
    %c0_14 = arith.constant 0 : index
    %25 = vector.load %arg19[%c32, %c0_14] : memref<128x16xf32, #tpu.memory_space<vmem>>, vector<32x16xf32>
    %26 = arith.maximumf %24, %25 : vector<32x16xf32>
    %c64 = arith.constant 64 : index
    %c0_15 = arith.constant 0 : index
    %27 = vector.load %arg19[%c64, %c0_15] : memref<128x16xf32, #tpu.memory_space<vmem>>, vector<32x16xf32>
    %28 = arith.maximumf %26, %27 : vector<32x16xf32>
    %c96 = arith.constant 96 : index
    %c0_16 = arith.constant 0 : index
    %29 = vector.load %arg19[%c96, %c0_16] : memref<128x16xf32, #tpu.memory_space<vmem>>, vector<32x16xf32>
    %30 = arith.maximumf %28, %29 : vector<32x16xf32>
    %c31 = arith.constant 31 : index
    %c0_17 = arith.constant 0 : index
    %31 = vector.load %arg19[%c31, %c0_17] : memref<128x16xf32, #tpu.memory_space<vmem>>, vector<32x16xf32>
    %cst_18 = arith.constant 0.000000e+00 : f32
    %32 = vector.broadcast %cst_18 : f32 to vector<32x16xf32>
    %33 = arith.select %16, %31, %32 : vector<32x16xi1>, vector<32x16xf32>
    %34 = arith.maximumf %30, %33 : vector<32x16xf32>
    %c95 = arith.constant 95 : index
    %c0_19 = arith.constant 0 : index
    %35 = vector.load %arg19[%c95, %c0_19] : memref<128x16xf32, #tpu.memory_space<vmem>>, vector<32x16xf32>
    %cst_20 = arith.constant 0.000000e+00 : f32
    %36 = vector.broadcast %cst_20 : f32 to vector<32x16xf32>
    %37 = arith.select %16, %35, %36 : vector<32x16xi1>, vector<32x16xf32>
    %38 = arith.maximumf %34, %37 : vector<32x16xf32>
    %c60 = arith.constant 60 : index
    %c0_21 = arith.constant 0 : index
    %39 = vector.load %arg19[%c60, %c0_21] : memref<128x16xf32, #tpu.memory_space<vmem>>, vector<32x16xf32>
    %cst_22 = arith.constant 0.000000e+00 : f32
    %40 = vector.broadcast %cst_22 : f32 to vector<32x16xf32>
    %41 = arith.select %22, %39, %40 : vector<32x16xi1>, vector<32x16xf32>
    %42 = arith.maximumf %38, %41 : vector<32x16xf32>
    %c92 = arith.constant 92 : index
    %c0_23 = arith.constant 0 : index
    %43 = vector.load %arg19[%c92, %c0_23] : memref<128x16xf32, #tpu.memory_space<vmem>>, vector<32x16xf32>
    %cst_24 = arith.constant 0.000000e+00 : f32
    %44 = vector.broadcast %cst_24 : f32 to vector<32x16xf32>
    %45 = arith.select %22, %43, %44 : vector<32x16xi1>, vector<32x16xf32>
    %46 = arith.maximumf %42, %45 : vector<32x16xf32>
    %c91 = arith.constant 91 : index
    %c0_25 = arith.constant 0 : index
    %47 = vector.load %arg19[%c91, %c0_25] : memref<128x16xf32, #tpu.memory_space<vmem>>, vector<32x16xf32>
    %cst_26 = arith.constant 0.000000e+00 : f32
    %48 = vector.broadcast %cst_26 : f32 to vector<32x16xf32>
    %49 = arith.select %23, %47, %48 : vector<32x16xi1>, vector<32x16xf32>
    %50 = arith.maximumf %46, %49 : vector<32x16xf32>
    %51 = arith.truncf %50 : vector<32x16xf32> to vector<32x16xbf16>
    %c0_27 = arith.constant 0 : index
    %c0_28 = arith.constant 0 : index
    %52 = vector.load %arg4[%c0_27, %c0_28] : memref<16x8xbf16, #tpu.memory_space<vmem>>, vector<16x8xbf16>
    %cst_29 = arith.constant dense<0.000000e+00> : vector<32x8xf32>
    %53 = tpu.matmul %51, %52, %cst_29 {dimension_numbers = #tpu.dot_dimension_numbers<[1], [0], [0], [1], [0, 0, 1, 1], [], []>} : vector<32x16xbf16>, vector<16x8xbf16>, vector<32x8xf32> -> vector<32x8xf32>
    %c0_30 = arith.constant 0 : index
    %c0_31 = arith.constant 0 : index
    %54 = vector.load %arg5[%c0_30, %c0_31] : memref<1x8xf32, #tpu.memory_space<vmem>>, vector<1x8xf32>
    %55 = vector.broadcast %54 : vector<1x8xf32> to vector<32x8xf32>
    %56 = arith.mulf %53, %55 : vector<32x8xf32>
    %c0_32 = arith.constant 0 : index
    %c0_33 = arith.constant 0 : index
    %57 = vector.load %arg6[%c0_32, %c0_33] : memref<1x8xf32, #tpu.memory_space<vmem>>, vector<1x8xf32>
    %58 = vector.broadcast %57 : vector<1x8xf32> to vector<32x8xf32>
    %59 = arith.addf %56, %58 : vector<32x8xf32>
    %cst_34 = arith.constant 0.000000e+00 : f32
    %60 = vector.broadcast %cst_34 : f32 to vector<32x8xf32>
    %61 = arith.maximumf %59, %60 : vector<32x8xf32>
    %cst_35 = arith.constant 0.000000e+00 : bf16
    %62 = vector.broadcast %cst_35 : bf16 to vector<42x8xbf16>
    %c0_36 = arith.constant 0 : index
    %c0_37 = arith.constant 0 : index
    %63 = vector.load %arg20[%c0_36, %c0_37] : memref<42x8xbf16, #tpu.memory_space<vmem>>, vector<42x8xbf16>
    tpu.vector_store %arg20[%c0_36, %c0_37], %62 {strides = array<i32>} : memref<42x8xbf16, #tpu.memory_space<vmem>>, vector<42x8xbf16>,
    %64 = arith.truncf %61 : vector<32x8xf32> to vector<32x8xbf16>
    %c5 = arith.constant 5 : index
    %c0_38 = arith.constant 0 : index
    %65 = vector.load %arg20[%c5, %c0_38] : memref<42x8xbf16, #tpu.memory_space<vmem>>, vector<32x8xbf16>
    tpu.vector_store %arg20[%c5, %c0_38], %64 {strides = array<i32>} : memref<42x8xbf16, #tpu.memory_space<vmem>>, vector<32x8xbf16>,
    %66 = tpu.iota {dimensions = array<i32: 0>} : vector<32x8xi32>
    %c3_i32_39 = arith.constant 3 : i32
    %67 = vector.broadcast %c3_i32_39 : i32 to vector<32x8xi32>
    %68 = arith.andi %66, %67 : vector<32x8xi32>
    %c2_i32_40 = arith.constant 2 : i32
    %69 = vector.broadcast %c2_i32_40 : i32 to vector<32x8xi32>
    %70 = arith.shrsi %66, %69 : vector<32x8xi32>
    %c3_i32_41 = arith.constant 3 : i32
    %71 = vector.broadcast %c3_i32_41 : i32 to vector<32x8xi32>
    %72 = arith.andi %70, %71 : vector<32x8xi32>
    %c0_42 = arith.constant 0 : index
    %c0_43 = arith.constant 0 : index
    %73 = vector.load %arg20[%c0_42, %c0_43] : memref<42x8xbf16, #tpu.memory_space<vmem>>, vector<32x8xbf16>
    %c-1_i32 = arith.constant -1 : i32
    %74 = vector.broadcast %c-1_i32 : i32 to vector<32x8xi32>
    %75 = arith.addi %72, %74 : vector<32x8xi32>
    %c0_i32 = arith.constant 0 : i32
    %76 = vector.broadcast %c0_i32 : i32 to vector<32x8xi32>
    %77 = arith.cmpi sge, %75, %76 : vector<32x8xi32>
    %c-1_i32_44 = arith.constant -1 : i32
    %78 = vector.broadcast %c-1_i32_44 : i32 to vector<32x8xi32>
    %79 = arith.addi %72, %78 : vector<32x8xi32>
    %c3_i32_45 = arith.constant 3 : i32
    %80 = vector.broadcast %c3_i32_45 : i32 to vector<32x8xi32>
    %81 = arith.cmpi sle, %79, %80 : vector<32x8xi32>
    %82 = arith.andi %77, %81 : vector<32x8xi1>
    %c-1_i32_46 = arith.constant -1 : i32
    %83 = vector.broadcast %c-1_i32_46 : i32 to vector<32x8xi32>
    %84 = arith.addi %68, %83 : vector<32x8xi32>
    %c0_i32_47 = arith.constant 0 : i32
    %85 = vector.broadcast %c0_i32_47 : i32 to vector<32x8xi32>
    %86 = arith.cmpi sge, %84, %85 : vector<32x8xi32>
    %c-1_i32_48 = arith.constant -1 : i32
    %87 = vector.broadcast %c-1_i32_48 : i32 to vector<32x8xi32>
    %88 = arith.addi %68, %87 : vector<32x8xi32>
    %c3_i32_49 = arith.constant 3 : i32
    %89 = vector.broadcast %c3_i32_49 : i32 to vector<32x8xi32>
    %90 = arith.cmpi sle, %88, %89 : vector<32x8xi32>
    %91 = arith.andi %86, %90 : vector<32x8xi1>
    %92 = arith.andi %82, %91 : vector<32x8xi1>
    %cst_50 = arith.constant 0.000000e+00 : bf16
    %93 = vector.broadcast %cst_50 : bf16 to vector<32x8xbf16>
    %94 = arith.select %92, %73, %93 : vector<32x8xi1>, vector<32x8xbf16>
    %c0_51 = arith.constant 0 : index
    %c0_52 = arith.constant 0 : index
    %95 = vector.load %arg21[%c0_51, %c0_52] : memref<32x72xbf16, #tpu.memory_space<vmem>>, vector<32x8xbf16>
    tpu.vector_store %arg21[%c0_51, %c0_52], %94 {strides = array<i32>} : memref<32x72xbf16, #tpu.memory_space<vmem>>, vector<32x8xbf16>,
    %c1 = arith.constant 1 : index
    %c0_53 = arith.constant 0 : index
    %96 = vector.load %arg20[%c1, %c0_53] : memref<42x8xbf16, #tpu.memory_space<vmem>>, vector<32x8xbf16>
    %c-1_i32_54 = arith.constant -1 : i32
    %97 = vector.broadcast %c-1_i32_54 : i32 to vector<32x8xi32>
    %98 = arith.addi %72, %97 : vector<32x8xi32>
    %c0_i32_55 = arith.constant 0 : i32
    %99 = vector.broadcast %c0_i32_55 : i32 to vector<32x8xi32>
    %100 = arith.cmpi sge, %98, %99 : vector<32x8xi32>
    %c-1_i32_56 = arith.constant -1 : i32
    %101 = vector.broadcast %c-1_i32_56 : i32 to vector<32x8xi32>
    %102 = arith.addi %72, %101 : vector<32x8xi32>
    %c3_i32_57 = arith.constant 3 : i32
    %103 = vector.broadcast %c3_i32_57 : i32 to vector<32x8xi32>
    %104 = arith.cmpi sle, %102, %103 : vector<32x8xi32>
    %105 = arith.andi %100, %104 : vector<32x8xi1>
    %c0_i32_58 = arith.constant 0 : i32
    %106 = vector.broadcast %c0_i32_58 : i32 to vector<32x8xi32>
    %107 = arith.addi %68, %106 : vector<32x8xi32>
    %c0_i32_59 = arith.constant 0 : i32
    %108 = vector.broadcast %c0_i32_59 : i32 to vector<32x8xi32>
    %109 = arith.cmpi sge, %107, %108 : vector<32x8xi32>
    %c0_i32_60 = arith.constant 0 : i32
    %110 = vector.broadcast %c0_i32_60 : i32 to vector<32x8xi32>
    %111 = arith.addi %68, %110 : vector<32x8xi32>
    %c3_i32_61 = arith.constant 3 : i32
    %112 = vector.broadcast %c3_i32_61 : i32 to vector<32x8xi32>
    %113 = arith.cmpi sle, %111, %112 : vector<32x8xi32>
    %114 = arith.andi %109, %113 : vector<32x8xi1>
    %115 = arith.andi %105, %114 : vector<32x8xi1>
    %cst_62 = arith.constant 0.000000e+00 : bf16
    %116 = vector.broadcast %cst_62 : bf16 to vector<32x8xbf16>
    %117 = arith.select %115, %96, %116 : vector<32x8xi1>, vector<32x8xbf16>
    %c0_63 = arith.constant 0 : index
    %c8 = arith.constant 8 : index
    %118 = vector.load %arg21[%c0_63, %c8] : memref<32x72xbf16, #tpu.memory_space<vmem>>, vector<32x8xbf16>
    tpu.vector_store %arg21[%c0_63, %c8], %117 {strides = array<i32>} : memref<32x72xbf16, #tpu.memory_space<vmem>>, vector<32x8xbf16>,
    %c2 = arith.constant 2 : index
    %c0_64 = arith.constant 0 : index
    %119 = vector.load %arg20[%c2, %c0_64] : memref<42x8xbf16, #tpu.memory_space<vmem>>, vector<32x8xbf16>
    %c-1_i32_65 = arith.constant -1 : i32
    %120 = vector.broadcast %c-1_i32_65 : i32 to vector<32x8xi32>
    %121 = arith.addi %72, %120 : vector<32x8xi32>
    %c0_i32_66 = arith.constant 0 : i32
    %122 = vector.broadcast %c0_i32_66 : i32 to vector<32x8xi32>
    %123 = arith.cmpi sge, %121, %122 : vector<32x8xi32>
    %c-1_i32_67 = arith.constant -1 : i32
    %124 = vector.broadcast %c-1_i32_67 : i32 to vector<32x8xi32>
    %125 = arith.addi %72, %124 : vector<32x8xi32>
    %c3_i32_68 = arith.constant 3 : i32
    %126 = vector.broadcast %c3_i32_68 : i32 to vector<32x8xi32>
    %127 = arith.cmpi sle, %125, %126 : vector<32x8xi32>
    %128 = arith.andi %123, %127 : vector<32x8xi1>
    %c1_i32_69 = arith.constant 1 : i32
    %129 = vector.broadcast %c1_i32_69 : i32 to vector<32x8xi32>
    %130 = arith.addi %68, %129 : vector<32x8xi32>
    %c0_i32_70 = arith.constant 0 : i32
    %131 = vector.broadcast %c0_i32_70 : i32 to vector<32x8xi32>
    %132 = arith.cmpi sge, %130, %131 : vector<32x8xi32>
    %c1_i32_71 = arith.constant 1 : i32
    %133 = vector.broadcast %c1_i32_71 : i32 to vector<32x8xi32>
    %134 = arith.addi %68, %133 : vector<32x8xi32>
    %c3_i32_72 = arith.constant 3 : i32
    %135 = vector.broadcast %c3_i32_72 : i32 to vector<32x8xi32>
    %136 = arith.cmpi sle, %134, %135 : vector<32x8xi32>
    %137 = arith.andi %132, %136 : vector<32x8xi1>
    %138 = arith.andi %128, %137 : vector<32x8xi1>
    %cst_73 = arith.constant 0.000000e+00 : bf16
    %139 = vector.broadcast %cst_73 : bf16 to vector<32x8xbf16>
    %140 = arith.select %138, %119, %139 : vector<32x8xi1>, vector<32x8xbf16>
    %c0_74 = arith.constant 0 : index
    %c16 = arith.constant 16 : index
    %141 = vector.load %arg21[%c0_74, %c16] : memref<32x72xbf16, #tpu.memory_space<vmem>>, vector<32x8xbf16>
    tpu.vector_store %arg21[%c0_74, %c16], %140 {strides = array<i32>} : memref<32x72xbf16, #tpu.memory_space<vmem>>, vector<32x8xbf16>,
    %c4 = arith.constant 4 : index
    %c0_75 = arith.constant 0 : index
    %142 = vector.load %arg20[%c4, %c0_75] : memref<42x8xbf16, #tpu.memory_space<vmem>>, vector<32x8xbf16>
    %c0_i32_76 = arith.constant 0 : i32
    %143 = vector.broadcast %c0_i32_76 : i32 to vector<32x8xi32>
    %144 = arith.addi %72, %143 : vector<32x8xi32>
    %c0_i32_77 = arith.constant 0 : i32
    %145 = vector.broadcast %c0_i32_77 : i32 to vector<32x8xi32>
    %146 = arith.cmpi sge, %144, %145 : vector<32x8xi32>
    %c0_i32_78 = arith.constant 0 : i32
    %147 = vector.broadcast %c0_i32_78 : i32 to vector<32x8xi32>
    %148 = arith.addi %72, %147 : vector<32x8xi32>
    %c3_i32_79 = arith.constant 3 : i32
    %149 = vector.broadcast %c3_i32_79 : i32 to vector<32x8xi32>
    %150 = arith.cmpi sle, %148, %149 : vector<32x8xi32>
    %151 = arith.andi %146, %150 : vector<32x8xi1>
    %c-1_i32_80 = arith.constant -1 : i32
    %152 = vector.broadcast %c-1_i32_80 : i32 to vector<32x8xi32>
    %153 = arith.addi %68, %152 : vector<32x8xi32>
    %c0_i32_81 = arith.constant 0 : i32
    %154 = vector.broadcast %c0_i32_81 : i32 to vector<32x8xi32>
    %155 = arith.cmpi sge, %153, %154 : vector<32x8xi32>
    %c-1_i32_82 = arith.constant -1 : i32
    %156 = vector.broadcast %c-1_i32_82 : i32 to vector<32x8xi32>
    %157 = arith.addi %68, %156 : vector<32x8xi32>
    %c3_i32_83 = arith.constant 3 : i32
    %158 = vector.broadcast %c3_i32_83 : i32 to vector<32x8xi32>
    %159 = arith.cmpi sle, %157, %158 : vector<32x8xi32>
    %160 = arith.andi %155, %159 : vector<32x8xi1>
    %161 = arith.andi %151, %160 : vector<32x8xi1>
    %cst_84 = arith.constant 0.000000e+00 : bf16
    %162 = vector.broadcast %cst_84 : bf16 to vector<32x8xbf16>
    %163 = arith.select %161, %142, %162 : vector<32x8xi1>, vector<32x8xbf16>
    %c0_85 = arith.constant 0 : index
    %c24 = arith.constant 24 : index
    %164 = vector.load %arg21[%c0_85, %c24] : memref<32x72xbf16, #tpu.memory_space<vmem>>, vector<32x8xbf16>
    tpu.vector_store %arg21[%c0_85, %c24], %163 {strides = array<i32>} : memref<32x72xbf16, #tpu.memory_space<vmem>>, vector<32x8xbf16>,
    %c5_86 = arith.constant 5 : index
    %c0_87 = arith.constant 0 : index
    %165 = vector.load %arg20[%c5_86, %c0_87] : memref<42x8xbf16, #tpu.memory_space<vmem>>, vector<32x8xbf16>
    %c0_i32_88 = arith.constant 0 : i32
    %166 = vector.broadcast %c0_i32_88 : i32 to vector<32x8xi32>
    %167 = arith.addi %72, %166 : vector<32x8xi32>
    %c0_i32_89 = arith.constant 0 : i32
    %168 = vector.broadcast %c0_i32_89 : i32 to vector<32x8xi32>
    %169 = arith.cmpi sge, %167, %168 : vector<32x8xi32>
    %c0_i32_90 = arith.constant 0 : i32
    %170 = vector.broadcast %c0_i32_90 : i32 to vector<32x8xi32>
    %171 = arith.addi %72, %170 : vector<32x8xi32>
    %c3_i32_91 = arith.constant 3 : i32
    %172 = vector.broadcast %c3_i32_91 : i32 to vector<32x8xi32>
    %173 = arith.cmpi sle, %171, %172 : vector<32x8xi32>
    %174 = arith.andi %169, %173 : vector<32x8xi1>
    %c0_i32_92 = arith.constant 0 : i32
    %175 = vector.broadcast %c0_i32_92 : i32 to vector<32x8xi32>
    %176 = arith.addi %68, %175 : vector<32x8xi32>
    %c0_i32_93 = arith.constant 0 : i32
    %177 = vector.broadcast %c0_i32_93 : i32 to vector<32x8xi32>
    %178 = arith.cmpi sge, %176, %177 : vector<32x8xi32>
    %c0_i32_94 = arith.constant 0 : i32
    %179 = vector.broadcast %c0_i32_94 : i32 to vector<32x8xi32>
    %180 = arith.addi %68, %179 : vector<32x8xi32>
    %c3_i32_95 = arith.constant 3 : i32
    %181 = vector.broadcast %c3_i32_95 : i32 to vector<32x8xi32>
    %182 = arith.cmpi sle, %180, %181 : vector<32x8xi32>
    %183 = arith.andi %178, %182 : vector<32x8xi1>
    %184 = arith.andi %174, %183 : vector<32x8xi1>
    %cst_96 = arith.constant 0.000000e+00 : bf16
    %185 = vector.broadcast %cst_96 : bf16 to vector<32x8xbf16>
    %186 = arith.select %184, %165, %185 : vector<32x8xi1>, vector<32x8xbf16>
    %c0_97 = arith.constant 0 : index
    %c32_98 = arith.constant 32 : index
    %187 = vector.load %arg21[%c0_97, %c32_98] : memref<32x72xbf16, #tpu.memory_space<vmem>>, vector<32x8xbf16>
    tpu.vector_store %arg21[%c0_97, %c32_98], %186 {strides = array<i32>} : memref<32x72xbf16, #tpu.memory_space<vmem>>, vector<32x8xbf16>,
    %c6 = arith.constant 6 : index
    %c0_99 = arith.constant 0 : index
    %188 = vector.load %arg20[%c6, %c0_99] : memref<42x8xbf16, #tpu.memory_space<vmem>>, vector<32x8xbf16>
    %c0_i32_100 = arith.constant 0 : i32
    %189 = vector.broadcast %c0_i32_100 : i32 to vector<32x8xi32>
    %190 = arith.addi %72, %189 : vector<32x8xi32>
    %c0_i32_101 = arith.constant 0 : i32
    %191 = vector.broadcast %c0_i32_101 : i32 to vector<32x8xi32>
    %192 = arith.cmpi sge, %190, %191 : vector<32x8xi32>
    %c0_i32_102 = arith.constant 0 : i32
    %193 = vector.broadcast %c0_i32_102 : i32 to vector<32x8xi32>
    %194 = arith.addi %72, %193 : vector<32x8xi32>
    %c3_i32_103 = arith.constant 3 : i32
    %195 = vector.broadcast %c3_i32_103 : i32 to vector<32x8xi32>
    %196 = arith.cmpi sle, %194, %195 : vector<32x8xi32>
    %197 = arith.andi %192, %196 : vector<32x8xi1>
    %c1_i32_104 = arith.constant 1 : i32
    %198 = vector.broadcast %c1_i32_104 : i32 to vector<32x8xi32>
    %199 = arith.addi %68, %198 : vector<32x8xi32>
    %c0_i32_105 = arith.constant 0 : i32
    %200 = vector.broadcast %c0_i32_105 : i32 to vector<32x8xi32>
    %201 = arith.cmpi sge, %199, %200 : vector<32x8xi32>
    %c1_i32_106 = arith.constant 1 : i32
    %202 = vector.broadcast %c1_i32_106 : i32 to vector<32x8xi32>
    %203 = arith.addi %68, %202 : vector<32x8xi32>
    %c3_i32_107 = arith.constant 3 : i32
    %204 = vector.broadcast %c3_i32_107 : i32 to vector<32x8xi32>
    %205 = arith.cmpi sle, %203, %204 : vector<32x8xi32>
    %206 = arith.andi %201, %205 : vector<32x8xi1>
    %207 = arith.andi %197, %206 : vector<32x8xi1>
    %cst_108 = arith.constant 0.000000e+00 : bf16
    %208 = vector.broadcast %cst_108 : bf16 to vector<32x8xbf16>
    %209 = arith.select %207, %188, %208 : vector<32x8xi1>, vector<32x8xbf16>
    %c0_109 = arith.constant 0 : index
    %c40 = arith.constant 40 : index
    %210 = vector.load %arg21[%c0_109, %c40] : memref<32x72xbf16, #tpu.memory_space<vmem>>, vector<32x8xbf16>
    tpu.vector_store %arg21[%c0_109, %c40], %209 {strides = array<i32>} : memref<32x72xbf16, #tpu.memory_space<vmem>>, vector<32x8xbf16>,
    %c8_110 = arith.constant 8 : index
    %c0_111 = arith.constant 0 : index
    %211 = vector.load %arg20[%c8_110, %c0_111] : memref<42x8xbf16, #tpu.memory_space<vmem>>, vector<32x8xbf16>
    %c1_i32_112 = arith.constant 1 : i32
    %212 = vector.broadcast %c1_i32_112 : i32 to vector<32x8xi32>
    %213 = arith.addi %72, %212 : vector<32x8xi32>
    %c0_i32_113 = arith.constant 0 : i32
    %214 = vector.broadcast %c0_i32_113 : i32 to vector<32x8xi32>
    %215 = arith.cmpi sge, %213, %214 : vector<32x8xi32>
    %c1_i32_114 = arith.constant 1 : i32
    %216 = vector.broadcast %c1_i32_114 : i32 to vector<32x8xi32>
    %217 = arith.addi %72, %216 : vector<32x8xi32>
    %c3_i32_115 = arith.constant 3 : i32
    %218 = vector.broadcast %c3_i32_115 : i32 to vector<32x8xi32>
    %219 = arith.cmpi sle, %217, %218 : vector<32x8xi32>
    %220 = arith.andi %215, %219 : vector<32x8xi1>
    %c-1_i32_116 = arith.constant -1 : i32
    %221 = vector.broadcast %c-1_i32_116 : i32 to vector<32x8xi32>
    %222 = arith.addi %68, %221 : vector<32x8xi32>
    %c0_i32_117 = arith.constant 0 : i32
    %223 = vector.broadcast %c0_i32_117 : i32 to vector<32x8xi32>
    %224 = arith.cmpi sge, %222, %223 : vector<32x8xi32>
    %c-1_i32_118 = arith.constant -1 : i32
    %225 = vector.broadcast %c-1_i32_118 : i32 to vector<32x8xi32>
    %226 = arith.addi %68, %225 : vector<32x8xi32>
    %c3_i32_119 = arith.constant 3 : i32
    %227 = vector.broadcast %c3_i32_119 : i32 to vector<32x8xi32>
    %228 = arith.cmpi sle, %226, %227 : vector<32x8xi32>
    %229 = arith.andi %224, %228 : vector<32x8xi1>
    %230 = arith.andi %220, %229 : vector<32x8xi1>
    %cst_120 = arith.constant 0.000000e+00 : bf16
    %231 = vector.broadcast %cst_120 : bf16 to vector<32x8xbf16>
    %232 = arith.select %230, %211, %231 : vector<32x8xi1>, vector<32x8xbf16>
    %c0_121 = arith.constant 0 : index
    %c48 = arith.constant 48 : index
    %233 = vector.load %arg21[%c0_121, %c48] : memref<32x72xbf16, #tpu.memory_space<vmem>>, vector<32x8xbf16>
    tpu.vector_store %arg21[%c0_121, %c48], %232 {strides = array<i32>} : memref<32x72xbf16, #tpu.memory_space<vmem>>, vector<32x8xbf16>,
    %c9 = arith.constant 9 : index
    %c0_122 = arith.constant 0 : index
    %234 = vector.load %arg20[%c9, %c0_122] : memref<42x8xbf16, #tpu.memory_space<vmem>>, vector<32x8xbf16>
    %c1_i32_123 = arith.constant 1 : i32
    %235 = vector.broadcast %c1_i32_123 : i32 to vector<32x8xi32>
    %236 = arith.addi %72, %235 : vector<32x8xi32>
    %c0_i32_124 = arith.constant 0 : i32
    %237 = vector.broadcast %c0_i32_124 : i32 to vector<32x8xi32>
    %238 = arith.cmpi sge, %236, %237 : vector<32x8xi32>
    %c1_i32_125 = arith.constant 1 : i32
    %239 = vector.broadcast %c1_i32_125 : i32 to vector<32x8xi32>
    %240 = arith.addi %72, %239 : vector<32x8xi32>
    %c3_i32_126 = arith.constant 3 : i32
    %241 = vector.broadcast %c3_i32_126 : i32 to vector<32x8xi32>
    %242 = arith.cmpi sle, %240, %241 : vector<32x8xi32>
    %243 = arith.andi %238, %242 : vector<32x8xi1>
    %c0_i32_127 = arith.constant 0 : i32
    %244 = vector.broadcast %c0_i32_127 : i32 to vector<32x8xi32>
    %245 = arith.addi %68, %244 : vector<32x8xi32>
    %c0_i32_128 = arith.constant 0 : i32
    %246 = vector.broadcast %c0_i32_128 : i32 to vector<32x8xi32>
    %247 = arith.cmpi sge, %245, %246 : vector<32x8xi32>
    %c0_i32_129 = arith.constant 0 : i32
    %248 = vector.broadcast %c0_i32_129 : i32 to vector<32x8xi32>
    %249 = arith.addi %68, %248 : vector<32x8xi32>
    %c3_i32_130 = arith.constant 3 : i32
    %250 = vector.broadcast %c3_i32_130 : i32 to vector<32x8xi32>
    %251 = arith.cmpi sle, %249, %250 : vector<32x8xi32>
    %252 = arith.andi %247, %251 : vector<32x8xi1>
    %253 = arith.andi %243, %252 : vector<32x8xi1>
    %cst_131 = arith.constant 0.000000e+00 : bf16
    %254 = vector.broadcast %cst_131 : bf16 to vector<32x8xbf16>
    %255 = arith.select %253, %234, %254 : vector<32x8xi1>, vector<32x8xbf16>
    %c0_132 = arith.constant 0 : index
    %c56 = arith.constant 56 : index
    %256 = vector.load %arg21[%c0_132, %c56] : memref<32x72xbf16, #tpu.memory_space<vmem>>, vector<32x8xbf16>
    tpu.vector_store %arg21[%c0_132, %c56], %255 {strides = array<i32>} : memref<32x72xbf16, #tpu.memory_space<vmem>>, vector<32x8xbf16>,
    %c10 = arith.constant 10 : index
    %c0_133 = arith.constant 0 : index
    %257 = vector.load %arg20[%c10, %c0_133] : memref<42x8xbf16, #tpu.memory_space<vmem>>, vector<32x8xbf16>
    %c1_i32_134 = arith.constant 1 : i32
    %258 = vector.broadcast %c1_i32_134 : i32 to vector<32x8xi32>
    %259 = arith.addi %72, %258 : vector<32x8xi32>
    %c0_i32_135 = arith.constant 0 : i32
    %260 = vector.broadcast %c0_i32_135 : i32 to vector<32x8xi32>
    %261 = arith.cmpi sge, %259, %260 : vector<32x8xi32>
    %c1_i32_136 = arith.constant 1 : i32
    %262 = vector.broadcast %c1_i32_136 : i32 to vector<32x8xi32>
    %263 = arith.addi %72, %262 : vector<32x8xi32>
    %c3_i32_137 = arith.constant 3 : i32
    %264 = vector.broadcast %c3_i32_137 : i32 to vector<32x8xi32>
    %265 = arith.cmpi sle, %263, %264 : vector<32x8xi32>
    %266 = arith.andi %261, %265 : vector<32x8xi1>
    %c1_i32_138 = arith.constant 1 : i32
    %267 = vector.broadcast %c1_i32_138 : i32 to vector<32x8xi32>
    %268 = arith.addi %68, %267 : vector<32x8xi32>
    %c0_i32_139 = arith.constant 0 : i32
    %269 = vector.broadcast %c0_i32_139 : i32 to vector<32x8xi32>
    %270 = arith.cmpi sge, %268, %269 : vector<32x8xi32>
    %c1_i32_140 = arith.constant 1 : i32
    %271 = vector.broadcast %c1_i32_140 : i32 to vector<32x8xi32>
    %272 = arith.addi %68, %271 : vector<32x8xi32>
    %c3_i32_141 = arith.constant 3 : i32
    %273 = vector.broadcast %c3_i32_141 : i32 to vector<32x8xi32>
    %274 = arith.cmpi sle, %272, %273 : vector<32x8xi32>
    %275 = arith.andi %270, %274 : vector<32x8xi1>
    %276 = arith.andi %266, %275 : vector<32x8xi1>
    %cst_142 = arith.constant 0.000000e+00 : bf16
    %277 = vector.broadcast %cst_142 : bf16 to vector<32x8xbf16>
    %278 = arith.select %276, %257, %277 : vector<32x8xi1>, vector<32x8xbf16>
    %c0_143 = arith.constant 0 : index
    %c64_144 = arith.constant 64 : index
    %279 = vector.load %arg21[%c0_143, %c64_144] : memref<32x72xbf16, #tpu.memory_space<vmem>>, vector<32x8xbf16>
    tpu.vector_store %arg21[%c0_143, %c64_144], %278 {strides = array<i32>} : memref<32x72xbf16, #tpu.memory_space<vmem>>, vector<32x8xbf16>,
    %c0_145 = arith.constant 0 : index
    %c0_146 = arith.constant 0 : index
    %280 = vector.load %arg21[%c0_145, %c0_146] : memref<32x72xbf16, #tpu.memory_space<vmem>>, vector<32x72xbf16>
    %c0_147 = arith.constant 0 : index
    %c0_148 = arith.constant 0 : index
    %281 = vector.load %arg7[%c0_147, %c0_148] : memref<72x8xbf16, #tpu.memory_space<vmem>>, vector<72x8xbf16>
    %cst_149 = arith.constant dense<0.000000e+00> : vector<32x8xf32>
    %282 = tpu.matmul %280, %281, %cst_149 {dimension_numbers = #tpu.dot_dimension_numbers<[1], [0], [0], [1], [0, 0, 1, 1], [], []>} : vector<32x72xbf16>, vector<72x8xbf16>, vector<32x8xf32> -> vector<32x8xf32>
    %c0_150 = arith.constant 0 : index
    %c0_151 = arith.constant 0 : index
    %283 = vector.load %arg8[%c0_150, %c0_151] : memref<1x8xf32, #tpu.memory_space<vmem>>, vector<1x8xf32>
    %284 = vector.broadcast %283 : vector<1x8xf32> to vector<32x8xf32>
    %285 = arith.mulf %282, %284 : vector<32x8xf32>
    %c0_152 = arith.constant 0 : index
    %c0_153 = arith.constant 0 : index
    %286 = vector.load %arg9[%c0_152, %c0_153] : memref<1x8xf32, #tpu.memory_space<vmem>>, vector<1x8xf32>
    %287 = vector.broadcast %286 : vector<1x8xf32> to vector<32x8xf32>
    %288 = arith.addf %285, %287 : vector<32x8xf32>
    %cst_154 = arith.constant 0.000000e+00 : f32
    %289 = vector.broadcast %cst_154 : f32 to vector<32x8xf32>
    %290 = arith.maximumf %288, %289 : vector<32x8xf32>
    %291 = arith.truncf %290 : vector<32x8xf32> to vector<32x8xbf16>
    %c0_155 = arith.constant 0 : index
    %c0_156 = arith.constant 0 : index
    %292 = vector.load %arg10[%c0_155, %c0_156] : memref<8x32xbf16, #tpu.memory_space<vmem>>, vector<8x32xbf16>
    %cst_157 = arith.constant dense<0.000000e+00> : vector<32x32xf32>
    %293 = tpu.matmul %291, %292, %cst_157 {dimension_numbers = #tpu.dot_dimension_numbers<[1], [0], [0], [1], [0, 0, 1, 1], [], []>} : vector<32x8xbf16>, vector<8x32xbf16>, vector<32x32xf32> -> vector<32x32xf32>
    %c0_158 = arith.constant 0 : index
    %c0_159 = arith.constant 0 : index
    %294 = vector.load %arg11[%c0_158, %c0_159] : memref<1x32xf32, #tpu.memory_space<vmem>>, vector<1x32xf32>
    %295 = vector.broadcast %294 : vector<1x32xf32> to vector<32x32xf32>
    %296 = arith.mulf %293, %295 : vector<32x32xf32>
    %c0_160 = arith.constant 0 : index
    %c0_161 = arith.constant 0 : index
    %297 = vector.load %arg12[%c0_160, %c0_161] : memref<1x32xf32, #tpu.memory_space<vmem>>, vector<1x32xf32>
    %298 = vector.broadcast %297 : vector<1x32xf32> to vector<32x32xf32>
    %299 = arith.addf %296, %298 : vector<32x32xf32>
    %c0_162 = arith.constant 0 : index
    %c0_163 = arith.constant 0 : index
    %300 = vector.load %arg13[%c0_162, %c0_163] : memref<16x32xbf16, #tpu.memory_space<vmem>>, vector<16x32xbf16>
    %cst_164 = arith.constant dense<0.000000e+00> : vector<32x32xf32>
    %301 = tpu.matmul %51, %300, %cst_164 {dimension_numbers = #tpu.dot_dimension_numbers<[1], [0], [0], [1], [0, 0, 1, 1], [], []>} : vector<32x16xbf16>, vector<16x32xbf16>, vector<32x32xf32> -> vector<32x32xf32>
    %c0_165 = arith.constant 0 : index
    %c0_166 = arith.constant 0 : index
    %302 = vector.load %arg14[%c0_165, %c0_166] : memref<1x32xf32, #tpu.memory_space<vmem>>, vector<1x32xf32>
    %303 = vector.broadcast %302 : vector<1x32xf32> to vector<32x32xf32>
    %304 = arith.mulf %301, %303 : vector<32x32xf32>
    %c0_167 = arith.constant 0 : index
    %c0_168 = arith.constant 0 : index
    %305 = vector.load %arg15[%c0_167, %c0_168] : memref<1x32xf32, #tpu.memory_space<vmem>>, vector<1x32xf32>
    %306 = vector.broadcast %305 : vector<1x32xf32> to vector<32x32xf32>
    %307 = arith.addf %304, %306 : vector<32x32xf32>
    %308 = arith.addf %299, %307 : vector<32x32xf32>
    %cst_169 = arith.constant 0.000000e+00 : f32
    %309 = vector.broadcast %cst_169 : f32 to vector<32x32xf32>
    %310 = arith.maximumf %308, %309 : vector<32x32xf32>
    %311 = vector.shape_cast %310 : vector<32x32xf32> to vector<2x16x32xf32>
    %cst_170 = arith.constant dense<0.000000e+00> : vector<2x32xf32>
    %312 = vector.multi_reduction <add>, %311, %cst_170 [1] : vector<2x16x32xf32> to vector<2x32xf32>
    %cst_171 = arith.constant 1.600000e+01 : f32
    %313 = vector.broadcast %cst_171 : f32 to vector<2x32xf32>
    %314 = arith.divf %312, %313 : vector<2x32xf32>
    %315 = arith.truncf %314 : vector<2x32xf32> to vector<2x32xbf16>
    %c0_172 = arith.constant 0 : index
    %c0_173 = arith.constant 0 : index
    %316 = vector.load %arg16[%c0_172, %c0_173] : memref<32x5xbf16, #tpu.memory_space<vmem>>, vector<32x5xbf16>
    %cst_174 = arith.constant dense<0.000000e+00> : vector<2x5xf32>
    %317 = tpu.matmul %315, %316, %cst_174 {dimension_numbers = #tpu.dot_dimension_numbers<[1], [0], [0], [1], [0, 0, 1, 1], [], []>} : vector<2x32xbf16>, vector<32x5xbf16>, vector<2x5xf32> -> vector<2x5xf32>
    %c0_175 = arith.constant 0 : index
    %c0_176 = arith.constant 0 : index
    %318 = vector.load %arg17[%c0_175, %c0_176] : memref<1x5xf32, #tpu.memory_space<vmem>>, vector<1x5xf32>
    %319 = vector.broadcast %318 : vector<1x5xf32> to vector<2x5xf32>
    %320 = arith.addf %317, %319 : vector<2x5xf32>
    %c0_177 = arith.constant 0 : index
    %c0_178 = arith.constant 0 : index
    %321 = vector.load %arg18[%c0_177, %c0_178] : memref<2x5xf32, #tpu.memory_space<vmem>>, vector<2x5xf32>
    tpu.vector_store %arg18[%c0_177, %c0_178], %320 {strides = array<i32>} : memref<2x5xf32, #tpu.memory_space<vmem>>, vector<2x5xf32>,
    return
  }
}

</mosaic_0001>

<bundles_post_ra>
// kernel: forward.1
= control target key start
LH: loop header
LB: loop body
LE: loop exit
PB: predicated region body
PF: predicated region fallthrough
CT: control target
= control target key end

     0   :  { %s3814_s0 = inlined_call_operand.vmem [shape: bf16[128,256], index: 0, kind: input, shape index: {}]   ;;  %s3815_s1 = inlined_call_operand.vmem [shape: bf16[256,16], index: 1, kind: input, shape index: {}]   ;;  %s3816_s2 = inlined_call_operand.vmem [shape: f32[1,16], index: 2, kind: input, shape index: {}]   ;;  %s3817_s3 = inlined_call_operand.vmem [shape: f32[1,16], index: 3, kind: input, shape index: {}]   ;;  %s3818_s4 = inlined_call_operand.vmem [shape: bf16[16,8], index: 4, kind: input, shape index: {}]   ;;  %s3819_s5 = inlined_call_operand.vmem [shape: f32[1,8], index: 5, kind: input, shape index: {}]   ;;  %s3820_s6 = inlined_call_operand.vmem [shape: f32[1,8], index: 6, kind: input, shape index: {}]   ;;  %s3821_s7 = inlined_call_operand.vmem [shape: bf16[72,8], index: 7, kind: input, shape index: {}]   ;;  %s3822_s8 = inlined_call_operand.vmem [shape: f32[1,8], index: 8, kind: input, shape index: {}]   ;;  %s3823_s9 = inlined_call_operand.vmem [shape: f32[1,8], index: 9, kind: input, shape index: {}]   ;;  %s3824_s10 = inlined_call_operand.vmem [shape: bf16[8,32], index: 10, kind: input, shape index: {}]   ;;  %s3825_s11 = inlined_call_operand.vmem [shape: f32[1,32], index: 11, kind: input, shape index: {}]   ;;  %s3826_s12 = inlined_call_operand.vmem [shape: f32[1,32], index: 12, kind: input, shape index: {}]   ;;  %s3827_s13 = inlined_call_operand.vmem [shape: bf16[16,32], index: 13, kind: input, shape index: {}]   ;;  %s3828_s14 = inlined_call_operand.vmem [shape: f32[1,32], index: 14, kind: input, shape index: {}]   ;;  %s3829_s15 = inlined_call_operand.vmem [shape: f32[1,32], index: 15, kind: input, shape index: {}]   ;;  %s3830_s16 = inlined_call_operand.vmem [shape: bf16[32,5], index: 16, kind: input, shape index: {}]   ;;  %s3831_s17 = inlined_call_operand.vmem [shape: f32[1,5], index: 17, kind: input, shape index: {}]   ;;  %s3832_s18 = inlined_call_operand.hbm [shape: f32[2,5], index: 18, kind: output, shape index: {}]  }
   0x1   :  { %3884 = sst [smem:[#allocation31_spill]] %s3814_s0 }
   0x2   :  { %3885 = sst [smem:[#allocation32_spill]] %s3815_s1 }
   0x3   :  { %3886 = sst [smem:[#allocation33_spill]] %s3816_s2 }
   0x4   :  { %s3887_s29 = sld [smem:[#allocation32_spill]]  ;;  %s3888_s23 = sld [smem:[#allocation31_spill]] }
   0xa   :  { %v2143_v0 = vld [vmem:[%s3887_s29 + $0x40] sm:$0xff]   ;;  %v2145_v2 = vld [vmem:[%s3887_s29 + $0x48] sm:$0xff]   ;;  %v2147_v4 = vld [vmem:[%s3887_s29 + $0x50] sm:$0xff]  }
   0xb   :  { %v2144_v1 = vld [vmem:[%s3887_s29] sm:$0xff]   ;;  %2006 = vmatprep.subr.bf16.mxu0 %v2143_v0  ;;  %v2146_v3 = vld [vmem:[%s3887_s29 + $0x8] sm:$0xff]   ;;  %v2148_v5 = vld [vmem:[%s3887_s29 + $0x10] sm:$0xff]  }
   0xc   :  { %2007 = vmatpush3.bf16.msra.mxu0 %v2144_v1  ;;  %v2149_v6 = vld [vmem:[%s3887_s29 + $0x58] sm:$0xff]   ;;  %v2151_v8 = vld [vmem:[%s3887_s29 + $0x60] sm:$0xff]   ;;  %v2153_v10 = vld [vmem:[%s3887_s29 + $0x68] sm:$0xff]  }
   0xd   :  { %2008 = vmatprep.subr.bf16.mxu0 %v2145_v2  ;;  %v2150_v7 = vld [vmem:[%s3887_s29 + $0x18] sm:$0xff]   ;;  %v2152_v9 = vld [vmem:[%s3887_s29 + $0x20] sm:$0xff]   ;;  %v2154_v12 = vld [vmem:[%s3887_s29 + $0x28] sm:$0xff]  }
   0xe   :  { %v2161_v11 = vld [vmem:[%s3888_s23 + $0x4] ss:$8 sps:$4 sm:$0xff]   ;;  %v2155_v13 = vld [vmem:[%s3887_s29 + $0x70] sm:$0xff]   ;;  %v2157_v15 = vld [vmem:[%s3887_s29 + $0x78] sm:$0xff]  }
   0xf   :  { %319 = vmatprep.mubr.bf16.mxu0 %v2161_v11  ;;  %v2156_v14 = vld [vmem:[%s3887_s29 + $0x30] sm:$0xff]   ;;  %v2158_v16 = vld [vmem:[%s3887_s29 + $0x38] sm:$0xff]   ;;  %v2159_v17 = vld [vmem:[%s3888_s23] ss:$8 sps:$4 sm:$0xff]  }
  0x10   :  { %2009 = vmatpush3.bf16.msra.mxu0 %v2146_v3  ;;  %v2162_v18 = vld [vmem:[%s3888_s23 + $0x14] ss:$8 sps:$4 sm:$0xff]  }
  0x11   :  { %2010 = vmatprep.subr.bf16.mxu0 %v2147_v4 }
  0x14   :  { %2011 = vmatpush3.bf16.msra.mxu0 %v2148_v5 }
  0x15   :  { %2012 = vmatprep.subr.bf16.mxu0 %v2149_v6 }
  0x18   :  { %2013 = vmatpush3.bf16.msra.mxu0 %v2150_v7 }
  0x19   :  { %2014 = vmatprep.subr.bf16.mxu0 %v2151_v8 }
  0x1c   :  { %2015 = vmatpush3.bf16.msra.mxu0 %v2152_v9 }
  0x1d   :  { %2016 = vmatprep.subr.bf16.mxu0 %v2153_v10 }
  0x20   :  { %2017 = vmatpush3.bf16.msra.mxu0 %v2154_v12 }
  0x21   :  { %2018 = vmatprep.subr.bf16.mxu0 %v2155_v13 }
  0x24   :  { %2019 = vmatpush3.bf16.msra.mxu0 %v2156_v14 }
  0x25   :  { %2020 = vmatprep.subr.bf16.mxu0 %v2157_v15 }
  0x28   :  { %2021 = vmatpush3.bf16.msra.mxu0 %v2158_v16 }
  0x29   :  { %23 = vsyncpa [#allocation6], 0  ;;  %v2164_v19 = vld [vmem:[%s3888_s23 + $0x10] ss:$8 sps:$4 sm:$0xff]   ;;  %v2165_v20 = vld [vmem:[%s3888_s23 + $0x24] ss:$8 sps:$4 sm:$0xff]  }
  0x2a   :  { %v2167_v21 = vld [vmem:[%s3888_s23 + $0x20] ss:$8 sps:$4 sm:$0xff]   ;;  %v2168_v22 = vld [vmem:[%s3888_s23 + $0x34] ss:$8 sps:$4 sm:$0xff]   ;;  %v2170_v23 = vld [vmem:[%s3888_s23 + $0x30] ss:$8 sps:$4 sm:$0xff]  }
  0x2b   :  { %320 = vmatmul.mubr.bf16.vlgmr.msra.gmra.mrb[0].mxu0 %v2159_v17  ;;  %v2171_v24 = vld [vmem:[%s3888_s23 + $0x44] ss:$8 sps:$4 sm:$0xff]   ;;  %v2173_v25 = vld [vmem:[%s3888_s23 + $0x40] ss:$8 sps:$4 sm:$0xff]   ;;  %v2174_v26 = vld [vmem:[%s3888_s23 + $0x54] ss:$8 sps:$4 sm:$0xff]  }
  0x2c   :  { %327 = vmatprep.mubr.bf16.mxu0 %v2162_v18  ;;  %v2176_v27 = vld [vmem:[%s3888_s23 + $0x50] ss:$8 sps:$4 sm:$0xff]   ;;  %v2177_v28 = vld [vmem:[%s3888_s23 + $0x64] ss:$8 sps:$4 sm:$0xff]   ;;  %v2179_v29 = vld [vmem:[%s3888_s23 + $0x60] ss:$8 sps:$4 sm:$0xff]  }
  0x2d   :  { %v2180_v30 = vld [vmem:[%s3888_s23 + $0x74] ss:$8 sps:$4 sm:$0xff]   ;;  %v2182_v31 = vld [vmem:[%s3888_s23 + $0x70] ss:$8 sps:$4 sm:$0xff]   ;;  %v2183_v32 = vld [vmem:[%s3818_s4] sm:$0xff]   ;;  %s3889_s27 = sld [smem:[#allocation33_spill]] }
  0x2e   :  { %2089 = vmatprep.subr.bf16.mxu1 %v2183_v32  ;;  %v2430_v38 = vld [vmem:[%s3817_s3] ss:$0 sm:$0xff]  ;;  %vm3835_vm0 = vcmask 130048   ;;  %vm3836_vm13 = vcmask 60416   ;;  %vm677_vm14 = vcmask 57344   ;;  %s2218_s30 = smov 16  }
  0x2f   :  { %2090 = vmatpush3.bf16.msra.mxu1 %v2183_v32  ;;  %s2219_s0 = smov 24   ;;  %s2220_s20 = smov 40  }
  0x30   :  { %s2221_s2 = smov 8   ;;  %s2222_s29 = smov 56  }
  0x31   :  { %s2223_s28 = smov 32  }
  0x33   :  { %328 = vmatmul.mubr.bf16.gmra.mrb[4].mxu0 %v2164_v19  ;;  %v2425_v35 = vld [vmem:[%s3889_s27] ss:$0 sm:$0xff] }
  0x34   :  { %335 = vmatprep.mubr.bf16.mxu0 %v2165_v20 }
  0x3b   :  { %336 = vmatmul.mubr.bf16.gmra.mrb[8].mxu0 %v2167_v21 }
  0x3c   :  { %343 = vmatprep.mubr.bf16.mxu0 %v2168_v22 }
  0x43   :  { %344 = vmatmul.mubr.bf16.gmra.mrb[12].mxu0 %v2170_v23 }
  0x44   :  { %351 = vmatprep.mubr.bf16.mxu0 %v2171_v24 }
  0x4b   :  { %352 = vmatmul.mubr.bf16.gmra.mrb[16].mxu0 %v2173_v25 }
  0x4c   :  { %359 = vmatprep.mubr.bf16.mxu0 %v2174_v26 }
  0x53   :  { %360 = vmatmul.mubr.bf16.gmra.mrb[20].mxu0 %v2176_v27 }
  0x54   :  { %367 = vmatprep.mubr.bf16.mxu0 %v2177_v28 }
  0x5b   :  { %368 = vmatmul.mubr.bf16.gmra.mrb[24].mxu0 %v2179_v29 }
  0x5c   :  { %375 = vmatprep.mubr.bf16.mxu0 %v2180_v30 }
  0x63   :  { %376 = vmatmul.mubr.bf16.gmra.mrb[28].mxu0 %v2182_v31 }
  0xfe   :  { %v2022_v33 = vpop.f32.mrb[0].mxu0 }
  0xff   :  { %v2023_v34 = vpop.f32.mrb[1].mxu0 }
 0x100   :  { %v2024_v36 = vadd.f32 %v2023_v34, %v2022_v33  ;;  %v2025_v37 = vpop.f32.mrb[2].mxu0 }
 0x101   :  { %v2026_v39 = vpop.f32.mrb[3].mxu0 }
 0x102   :  { %v391_v40 = vmul.f32 %v2024_v36, %v2425_v35  ;;  %v2027_v41 = vadd.f32 %v2026_v39, %v2025_v37 }
 0x104   :  { %v414_v42 = vadd.f32 %v2430_v38, %v391_v40  ;;  %v392_v43 = vmul.f32 %v2027_v41, %v2425_v35 }
 0x106   :  { %v430_v44 = vmax.f32 %v414_v42, 0.0  ;;  %v415_v45 = vadd.f32 %v2430_v38, %v392_v43  ;;  %v2028_v46 = vpop.f32.mrb[4].mxu0 }
 0x107   :  { %v2029_v47 = vpop.f32.mrb[5].mxu0 }
 0x108   :  { %447 = vst.msk [vmem:[#allocation2] sm:$0xff] %vm3835_vm0, %v430_v44  ;;  %v431_v48 = vmax.f32 %v415_v45, 0.0  ;;  %v2030_v49 = vadd.f32 %v2029_v47, %v2028_v46  ;;  %v2031_v50 = vpop.f32.mrb[6].mxu0  ;;  %v463_v46 = vlaneseq }
 0x109   :  { %v2032_v51 = vpop.f32.mrb[7].mxu0 }
 0x10a   :  { %448 = vst.msk [vmem:[#allocation2 + $0x8] sm:$0xff] %vm3835_vm0, %v431_v48  ;;  %v393_v52 = vmul.f32 %v2030_v49, %v2425_v35  ;;  %v2033_v53 = vadd.f32 %v2032_v51, %v2031_v50 }
 0x10c   :  { %v416_v54 = vadd.f32 %v2430_v38, %v393_v52  ;;  %v394_v55 = vmul.f32 %v2033_v53, %v2425_v35  ;;  %v464_v53 = vshrl.u32 %v463_v46, 7 }
 0x10e   :  { %v432_v56 = vmax.f32 %v416_v54, 0.0  ;;  %v417_v57 = vadd.f32 %v2430_v38, %v394_v55  ;;  %v2034_v58 = vpop.f32.mrb[8].mxu0 }
 0x10f   :  { %v2035_v59 = vpop.f32.mrb[9].mxu0 }
 0x110   :  { %449 = vst.msk [vmem:[#allocation2 + $0x10] sm:$0xff] %vm3835_vm0, %v432_v56  ;;  %v433_v60 = vmax.f32 %v417_v57, 0.0  ;;  %v2036_v61 = vadd.f32 %v2035_v59, %v2034_v58  ;;  %v2037_v62 = vpop.f32.mrb[10].mxu0 }
 0x111   :  { %v2038_v63 = vpop.f32.mrb[11].mxu0 }
 0x112   :  { %450 = vst.msk [vmem:[#allocation2 + $0x18] sm:$0xff] %vm3835_vm0, %v433_v60  ;;  %v395_v0 = vmul.f32 %v2036_v61, %v2425_v35  ;;  %v2039_v1 = vadd.f32 %v2038_v63, %v2037_v62  ;;  %v465_v60 = vadd.s32 8, %v464_v53 }
 0x114   :  { %v418_v2 = vadd.f32 %v2430_v38, %v395_v0  ;;  %v396_v3 = vmul.f32 %v2039_v1, %v2425_v35  ;;  %v2473_v1 = vand.u32 3, %v464_v53 }
 0x116   :  { %v434_v4 = vmax.f32 %v418_v2, 0.0  ;;  %v419_v5 = vadd.f32 %v2430_v38, %v396_v3  ;;  %v2040_v6 = vpop.f32.mrb[12].mxu0  ;;  %v476_v2 = vshra.s32 %v464_v53, 2  ;;  %vm472_vm1 = vcmp.ge.s32.totalorder %v2473_v1, 1 }
 0x117   :  { %v2041_v7 = vpop.f32.mrb[13].mxu0 }
 0x118   :  { %451 = vst.msk [vmem:[#allocation2 + $0x20] sm:$0xff] %vm3835_vm0, %v434_v4  ;;  %v435_v8 = vmax.f32 %v419_v5, 0.0  ;;  %v2042_v9 = vadd.f32 %v2041_v7, %v2040_v6  ;;  %v2043_v10 = vpop.f32.mrb[14].mxu0  ;;  %v2477_v6 = vand.u32 3, %v465_v60  ;;  %v492_v7 = vld [vmem:[#allocation2] sm:$0xff] }
 0x119   :  { %v2044_v11 = vpop.f32.mrb[15].mxu0 }
 0x11a   :  { %452 = vst.msk [vmem:[#allocation2 + $0x28] sm:$0xff] %vm3835_vm0, %v435_v8  ;;  %v397_v12 = vmul.f32 %v2042_v9, %v2425_v35  ;;  %v2045_v13 = vadd.f32 %v2044_v11, %v2043_v10  ;;  %v466_v10 = vadd.s32 16, %v464_v53  ;;  %vm473_vm2 = vcmp.ge.s32.totalorder %v2477_v6, 1 }
 0x11c   :  { %v420_v14 = vadd.f32 %v2430_v38, %v397_v12  ;;  %v398_v15 = vmul.f32 %v2045_v13, %v2425_v35  ;;  %v477_v13 = vshra.s32 %v465_v60, 2 }
 0x11e   :  { %v436_v16 = vmax.f32 %v420_v14, 0.0  ;;  %v421_v17 = vadd.f32 %v2430_v38, %v398_v15  ;;  %v2046_v18 = vpop.f32.mrb[16].mxu0  ;;  %v2482_v15 = vand.u32 3, %v476_v2  ;;  %v3898_v2 = vmov 0 }
 0x11f   :  { %v2047_v19 = vpop.f32.mrb[17].mxu0  ;;  %v496_v3 = vld [vmem:[#allocation2 + $0x20] sm:$0xff] }
 0x120   :  { %453 = vst.msk [vmem:[#allocation2 + $0x30] sm:$0xff] %vm3835_vm0, %v436_v16  ;;  %v437_v20 = vmax.f32 %v421_v17, 0.0  ;;  %v2048_v21 = vadd.f32 %v2047_v19, %v2046_v18  ;;  %v2049_v22 = vpop.f32.mrb[18].mxu0  ;;  %v500_v14 = vmax.f32 %v492_v7, %v496_v3  ;;  %v493_v16 = vld [vmem:[#allocation2 + $0x8] sm:$0xff]  ;;  %v467_v18 = vadd.s32 24, %v464_v53 }
 0x121   :  { %v2050_v23 = vpop.f32.mrb[19].mxu0  ;;  %v497_v8 = vld [vmem:[#allocation2 + $0x28] sm:$0xff]  ;;  %vm484_vm3 = vcmp.ge.s32.totalorder %v2482_v15, 1 }
 0x122   :  { %454 = vst.msk [vmem:[#allocation2 + $0x38] sm:$0xff] %vm3835_vm0, %v437_v20  ;;  %v399_v24 = vmul.f32 %v2048_v21, %v2425_v35  ;;  %v2051_v25 = vadd.f32 %v2050_v23, %v2049_v22  ;;  %v501_v21 = vmax.f32 %v493_v16, %v497_v8  ;;  %v520_v23 = vld [vmem:[#allocation2 + $0x1f] sm:$0xff]  ;;  %vm2515_vm6 = vmand %vm484_vm3, %vm472_vm1 }
 0x124   :  { %v422_v26 = vadd.f32 %v2430_v38, %v399_v24  ;;  %v400_v27 = vmul.f32 %v2051_v25, %v2425_v35  ;;  %v2486_v25 = vand.u32 3, %v466_v10 }
 0x126   :  { %v438_v28 = vmax.f32 %v422_v26, 0.0  ;;  %v423_v29 = vadd.f32 %v2430_v38, %v400_v27  ;;  %v2052_v30 = vpop.f32.mrb[20].mxu0  ;;  %v2489_v26 = vand.u32 3, %v477_v13  ;;  %vm474_vm4 = vcmp.ge.s32.totalorder %v2486_v25, 1 }
 0x127   :  { %v2053_v31 = vpop.f32.mrb[21].mxu0 }
 0x128   :  { %455 = vst.msk [vmem:[#allocation2 + $0x40] sm:$0xff] %vm3835_vm0, %v438_v28  ;;  %v439_v32 = vmax.f32 %v423_v29, 0.0  ;;  %v2054_v33 = vadd.f32 %v2053_v31, %v2052_v30  ;;  %v2055_v34 = vpop.f32.mrb[22].mxu0  ;;  %v521_v29 = vld [vmem:[#allocation2 + $0x27] sm:$0xff]  ;;  %vm485_vm5 = vcmp.ge.s32.totalorder %v2489_v26, 1 }
 0x129   :  { %v2056_v36 = vpop.f32.mrb[23].mxu0  ;;  %vm2523_vm7 = vmand %vm485_vm5, %vm473_vm2  ;;  %v523_v7 = vld [vmem:[#allocation2 + $0x37] sm:$0xff] }
 0x12a   :  { %456 = vst.msk [vmem:[#allocation2 + $0x48] sm:$0xff] %vm3835_vm0, %v439_v32  ;;  %v401_v37 = vmul.f32 %v2054_v33, %v2425_v35  ;;  %v2057_v39 = vadd.f32 %v2056_v36, %v2055_v34  ;;  %v478_v32 = vshra.s32 %v466_v10, 2  ;;  %v479_v33 = vshra.s32 %v467_v18, 2  ;;  %v498_v34 = vld [vmem:[#allocation2 + $0x30] sm:$0xff] }
 0x12c   :  { %v424_v40 = vadd.f32 %v2430_v38, %v401_v37  ;;  %v402_v41 = vmul.f32 %v2057_v39, %v2425_v35 }
 0x12e   :  { %v440_v42 = vmax.f32 %v424_v40, 0.0  ;;  %v425_v43 = vadd.f32 %v2430_v38, %v402_v41  ;;  %v2058_v44 = vpop.f32.mrb[24].mxu0  ;;  %v2495_v41 = vand.u32 3, %v467_v18 }
 0x12f   :  { %v2059_v45 = vpop.f32.mrb[25].mxu0  ;;  %v504_v9 = vld [vmem:[#allocation2 + $0x40] sm:$0xff] }
 0x130   :  { %457 = vst.msk [vmem:[#allocation2 + $0x50] sm:$0xff] %vm3835_vm0, %v440_v42  ;;  %v441_v47 = vmax.f32 %v425_v43, 0.0  ;;  %v2060_v48 = vadd.f32 %v2059_v45, %v2058_v44  ;;  %v2061_v49 = vpop.f32.mrb[26].mxu0  ;;  %v508_v22 = vmax.f32 %v500_v14, %v504_v9  ;;  %v544_v40 = vld [vmem:[#allocation2 + $0x3c] sm:$0xff]  ;;  %v525_v42 = vsel %vm473_vm2, %v521_v29, 0.0  ;;  %v494_v44 = vld [vmem:[#allocation2 + $0x10] sm:$0xff] }
 0x131   :  { %v2062_v50 = vpop.f32.mrb[27].mxu0  ;;  %v505_v17 = vld [vmem:[#allocation2 + $0x48] sm:$0xff]  ;;  %v499_v45 = vld [vmem:[#allocation2 + $0x38] sm:$0xff]  ;;  %v548_v53 = vsel %vm484_vm3, %v544_v40, 0.0  ;;  %vm475_vm8 = vcmp.ge.s32.totalorder %v2495_v41, 1 }
 0x132   :  { %458 = vst.msk [vmem:[#allocation2 + $0x58] sm:$0xff] %vm3835_vm0, %v441_v47  ;;  %v403_v51 = vmul.f32 %v2060_v48, %v2425_v35  ;;  %v2063_v52 = vadd.f32 %v2062_v50, %v2061_v49  ;;  %v509_v27 = vmax.f32 %v501_v21, %v505_v17  ;;  %v545_v49 = vld [vmem:[#allocation2 + $0x44] sm:$0xff] }
 0x133   :  { %v549_v3 = vsel %vm485_vm5, %v545_v49, 0.0 }
 0x134   :  { %v426_v54 = vadd.f32 %v2430_v38, %v403_v51  ;;  %v404_v55 = vmul.f32 %v2063_v52, %v2425_v35  ;;  %v502_v51 = vmax.f32 %v494_v44, %v498_v34 }
 0x136   :  { %v442_v56 = vmax.f32 %v426_v54, 0.0  ;;  %v427_v57 = vadd.f32 %v2430_v38, %v404_v55  ;;  %v2064_v58 = vpop.f32.mrb[28].mxu0  ;;  %v2507_v54 = vand.u32 3, %v478_v32  ;;  %v2509_v55 = vand.u32 3, %v479_v33 }
 0x137   :  { %v2065_v59 = vpop.f32.mrb[29].mxu0  ;;  %v506_v46 = vld [vmem:[#allocation2 + $0x50] sm:$0xff] }
 0x138   :  { %459 = vst.msk [vmem:[#allocation2 + $0x60] sm:$0xff] %vm3835_vm0, %v442_v56  ;;  %v443_v61 = vmax.f32 %v427_v57, 0.0  ;;  %v2066_v62 = vadd.f32 %v2065_v59, %v2064_v58  ;;  %v2067_v63 = vpop.f32.mrb[30].mxu0  ;;  %v495_v56 = vld [vmem:[#allocation2 + $0x18] sm:$0xff]  ;;  %vm486_vm9 = vcmp.ge.s32.totalorder %v2507_v54, 1  ;;  %vm487_vm10 = vcmp.ge.s32.totalorder %v2509_v55, 1 }
 0x139   :  { %v2068_v0 = vpop.f32.mrb[31].mxu0  ;;  %v507_v57 = vld [vmem:[#allocation2 + $0x58] sm:$0xff]  ;;  %vm490_vm11 = vmand %vm486_vm9, %vm474_vm4  ;;  %v3866_v58 = vmov 0   ;;  %vm1027_vm15 = vcmp.ge.s32.totalorder %v2507_v54, 0 }
 0x13a   :  { %460 = vst.msk [vmem:[#allocation2 + $0x68] sm:$0xff] %vm3835_vm0, %v443_v61  ;;  %v405_v4 = vmul.f32 %v2066_v62, %v2425_v35  ;;  %v2069_v5 = vadd.f32 %v2068_v0, %v2067_v63  ;;  %v503_v62 = vmax.f32 %v495_v56, %v499_v45  ;;  %v510_v63 = vmax.f32 %v502_v51, %v506_v46  ;;  %v522_v0 = vld [vmem:[#allocation2 + $0x2f] sm:$0xff]  ;;  %vm491_vm12 = vmand %vm487_vm10, %vm475_vm8 }
 0x13b   :  { %v526_v18 = vsel %vm474_vm4, %v522_v0, 0.0  ;;  %v547_v32 = vld [vmem:[#allocation2 + $0x54] sm:$0xff]  ;;  %672 = vst.msk [vmem:[#allocation3] sm:$0xf] %vm3836_vm13, %v3866_v58  ;;  %673 = vst.msk [vmem:[#allocation3 + $0x4] sm:$0xf] %vm3836_vm13, %v3866_v58 }
 0x13c   :  { %v428_v11 = vadd.f32 %v2430_v38, %v405_v4  ;;  %v406_v12 = vmul.f32 %v2069_v5, %v2425_v35  ;;  %674 = vst.msk [vmem:[#allocation3 + $0x8] sm:$0xf] %vm3836_vm13, %v3866_v58  ;;  %675 = vst.msk [vmem:[#allocation3 + $0xc] sm:$0xf] %vm3836_vm13, %v3866_v58  ;;  %v2594_v0 = vadd.s32 4294967295, %v2486_v25 }
 0x13d   :  { %676 = vst.msk [vmem:[#allocation3 + $0x10] sm:$0xf] %vm3836_vm13, %v3866_v58 }
 0x13e   :  { %v444_v19 = vmax.f32 %v428_v11, 0.0  ;;  %v429_v20 = vadd.f32 %v2430_v38, %v406_v12  ;;  %v524_v38 = vsel %vm472_vm1, %v520_v23, 0.0  ;;  %v511_v12 = vmax.f32 %v503_v62, %v507_v57  ;;  %v546_v23 = vld [vmem:[#allocation2 + $0x4c] sm:$0xff]  ;;  %678 = vst.msk [vmem:[#allocation3 + $0x14] sm:$0x1] %vm677_vm14, %v3866_v58 }
 0x13f   :  { %v512_v24 = vld [vmem:[#allocation2 + $0x60] sm:$0xff]  ;;  %v943_v62 = vadd.s32 1, %v2495_v41  ;;  %vm1032_vm14 = vcmp.le.s32.totalorder %v2509_v55, 3 }
 0x140   :  { %461 = vst.msk [vmem:[#allocation2 + $0x70] sm:$0xff] %vm3835_vm0, %v444_v19  ;;  %v445_v35 = vmax.f32 %v429_v20, 0.0  ;;  %v516_v28 = vmax.f32 %v508_v22, %v512_v24  ;;  %v532_v30 = vld [vmem:[#allocation2 + $0x5f] sm:$0xff] }
 0x141   :  { %v513_v31 = vld [vmem:[#allocation2 + $0x68] sm:$0xff]  ;;  %v536_v43 = vsel %vm472_vm1, %v532_v30, 0.0  ;;  %v556_v50 = vld [vmem:[#allocation2 + $0x5c] sm:$0xff]  ;;  %vm1031_vm1 = vcmp.le.s32.totalorder %v2507_v54, 3  ;;  %vm3918_vm13 = vcmp.le.s32.totalorder %v943_v62, 3 }
 0x142   :  { %462 = vst.msk [vmem:[#allocation2 + $0x78] sm:$0xff] %vm3835_vm0, %v445_v35  ;;  %v517_v36 = vmax.f32 %v509_v27, %v513_v31  ;;  %v528_v37 = vmax.f32 %v516_v28, %v524_v38  ;;  %v533_v39 = vld [vmem:[#allocation2 + $0x67] sm:$0xff]  ;;  %v560_v4 = vsel %vm484_vm3, %v556_v50, 0.0  ;;  %v568_v10 = vld [vmem:[#allocation2 + $0x5b] sm:$0xff]  ;;  %v527_v27 = vsel %vm475_vm8, %v523_v7, 0.0 }
 0x143   :  { %v537_v52 = vsel %vm473_vm2, %v533_v39, 0.0  ;;  %v557_v61 = vld [vmem:[#allocation2 + $0x64] sm:$0xff]  ;;  %v572_v24 = vsel %vm2515_vm6, %v568_v10, 0.0  ;;  %v1291_v10 = vadd.s32 1, %v2507_v54 }
 0x144   :  { %v529_v47 = vmax.f32 %v517_v36, %v525_v42  ;;  %v540_v48 = vmax.f32 %v528_v37, %v536_v43  ;;  %v569_v11 = vld [vmem:[#allocation2 + $0x63] sm:$0xff]  ;;  %v561_v16 = vsel %vm485_vm5, %v557_v61, 0.0  ;;  %v550_v36 = vsel %vm486_vm9, %v546_v23, 0.0 }
 0x145   :  { %v573_v35 = vsel %vm2523_vm7, %v569_v11, 0.0  ;;  %v551_v43 = vsel %vm487_vm10, %v547_v32, 0.0  ;;  %v942_v61 = vadd.s32 1, %v2486_v25  ;;  %v3904_v25 = vmov 0 }
 0x146   :  { %v541_v59 = vmax.f32 %v529_v47, %v537_v52  ;;  %v552_v60 = vmax.f32 %v540_v48, %v548_v53 }
 0x147   :  { %v514_v5 = vld [vmem:[#allocation2 + $0x70] sm:$0xff] }
 0x148   :  { %v553_v8 = vmax.f32 %v541_v59, %v549_v3  ;;  %v564_v9 = vmax.f32 %v552_v60, %v560_v4  ;;  %v518_v13 = vmax.f32 %v510_v63, %v514_v5  ;;  %v534_v14 = vld [vmem:[#allocation2 + $0x6f] sm:$0xff]  ;;  %v758_v59 = vadd.s32 4294967295, %v2507_v54 }
 0x149   :  { %v515_v17 = vld [vmem:[#allocation2 + $0x78] sm:$0xff]  ;;  %v538_v28 = vsel %vm474_vm4, %v534_v14, 0.0  ;;  %v558_v33 = vld [vmem:[#allocation2 + $0x6c] sm:$0xff]  ;;  %v759_v60 = vadd.s32 4294967295, %v2509_v55  ;;  %vm2589_vm4 = vmand %vm1027_vm15, %vm1031_vm1  ;;  %v2601_v3 = vadd.s32 4294967295, %v2495_v41  ;;  %v3901_v4 = vmov 0 }
 0x14a   :  { %v565_v19 = vmax.f32 %v553_v8, %v561_v16  ;;  %v519_v20 = vmax.f32 %v511_v12, %v515_v17  ;;  %v530_v21 = vmax.f32 %v518_v13, %v526_v18  ;;  %v535_v22 = vld [vmem:[#allocation2 + $0x77] sm:$0xff]  ;;  %v576_v29 = vmax.f32 %v564_v9, %v572_v24  ;;  %v570_v47 = vld [vmem:[#allocation2 + $0x6b] sm:$0xff] }
 0x14b   :  { %v539_v34 = vsel %vm475_vm8, %v535_v22, 0.0  ;;  %v559_v42 = vld [vmem:[#allocation2 + $0x74] sm:$0xff]  ;;  %v562_v44 = vsel %vm486_vm9, %v558_v33, 0.0  ;;  %v574_v51 = vsel %vm490_vm11, %v570_v47, 0.0  ;;  %vm762_vm2 = vcmp.ge.s32.totalorder %v758_v59, 0 }
 0x14c   :  { %v577_v30 = vmax.f32 %v565_v19, %v573_v35  ;;  %v531_v31 = vmax.f32 %v519_v20, %v527_v27  ;;  %v542_v38 = vmax.f32 %v530_v21, %v538_v28  ;;  %v571_v48 = vld [vmem:[#allocation2 + $0x73] sm:$0xff]  ;;  %v563_v49 = vsel %vm487_vm10, %v559_v42, 0.0  ;;  %vm1112_vm10 = vmpackc.low %vm2589_vm4, %vm2589_vm4 }
 0x14d   :  { %v575_v52 = vsel %vm491_vm12, %v571_v48, 0.0  ;;  %vm766_vm3 = vcmp.le.s32.totalorder %v758_v59, 3  ;;  %vm763_vm5 = vcmp.ge.s32.totalorder %v759_v60, 0  ;;  %vm767_vm6 = vcmp.le.s32.totalorder %v759_v60, 3 }
 0x14e   :  { %v2550_v37 = vpack.c.bf16 %v577_v30, %v576_v29  ;;  %v543_v39 = vmax.f32 %v531_v31, %v539_v34  ;;  %v554_v40 = vmax.f32 %v542_v38, %v550_v36  ;;  %vm2596_vm7 = vmand %vm762_vm2, %vm766_vm3  ;;  %vm3842_vm8 = vcmp.le.s32.totalorder %v942_v61, 3 }
 0x14f   :  { %v3899_v2 = vsel %vm2596_vm7, 4294967295, %v3898_v2  ;;  %vm3839_vm9 = vcmp.le.s32.totalorder %v943_v62, 3  ;;  %vm2606_vm11 = vmand %vm763_vm5, %vm767_vm6  ;;  %vm1028_vm12 = vcmp.ge.s32.totalorder %v2509_v55, 0  ;;  %vm3837_vm15 = vcmp.ge.s32.totalorder %v2594_v0, 0 }
 0x150   :  { %3894 = vst [vmem:[#allocation8_spill] sm:$0xff] %v2550_v37  ;;  %2091 = vmatprep.mubr.msk.bf16.mxu1 %vm3835_vm0, %v2550_v37  ;;  %v555_v45 = vmax.f32 %v543_v39, %v551_v43  ;;  %v566_v46 = vmax.f32 %v554_v40, %v562_v44  ;;  %3900 = vst [vmem:[#allocation10_spill] sm:$0xff] %v3899_v2  ;;  %v3902_v4 = vsel %vm2606_vm11, 4294967295, %v3901_v4  ;;  %v3906_v41 = vmov 0 }
 0x151   :  { %3903 = vst [vmem:[#allocation11_spill] sm:$0xff] %v3902_v4  ;;  %vm2616_vm1 = vmand %vm2596_vm7, %vm3842_vm8  ;;  %v1292_v5 = vadd.s32 1, %v2509_v55  ;;  %vm3838_vm3 = vcmp.ge.s32.totalorder %v2601_v3, 0  ;;  %v3910_v8 = vmov 0  ;;  %v1116_v55 = vsel %vm1112_vm10, 65537, %v3866_v58 }
 0x152   :  { %v567_v50 = vmax.f32 %v555_v45, %v563_v49  ;;  %v578_v53 = vmax.f32 %v566_v46, %v574_v51  ;;  %v3905_v25 = vsel %vm2616_vm1, 4294967295, %v3904_v25  ;;  %vm2623_vm2 = vmand %vm2606_vm11, %vm3839_vm9  ;;  %v1138_v11 = vshrl.u32 %v1116_v55, 16 }
 0x153   :  { %v3907_v41 = vsel %vm2623_vm2, 4294967295, %v3906_v41  ;;  %vm2629_vm5 = vmand %vm1028_vm12, %vm1032_vm14  ;;  %vm1296_vm14 = vcmp.ge.s32.totalorder %v1292_v5, 0  ;;  %v1141_v54 = vshll.u32 %v1116_v55, 16  ;;  %v3914_v12 = vmov 0 }
 0x154   :  { %v579_v56 = vmax.f32 %v567_v50, %v575_v52  ;;  %vm2652_vm12 = vmand %vm2629_vm5, %vm3838_vm3  ;;  %vm1295_vm2 = vcmp.ge.s32.totalorder %v1291_v10, 0  ;;  %v757_v16 = vadd.s32 4294967295, %v2489_v26  ;;  %v1140_v17 = vrot.slane %v1138_v11, 5 }
 0x155   :  { %vm2672_vm9 = vmand %vm2589_vm4, %vm3842_vm8  ;;  %v1143_v18 = vrot.slane %v1141_v54, 6  ;;  %v2698_v19 = vadd.s32 4294967295, %v2473_v1  ;;  %v2705_v21 = vadd.s32 1, %v2477_v6  ;;  %v2731_v35 = vadd.s32 4294967295, %v2477_v6 }
 0x156   :  { %v2568_v57 = vpack.c.bf16 %v579_v56, %v578_v53  ;;  %v3915_v12 = vsel %vm2672_vm9, 4294967295, %v3914_v12  ;;  %vm2686_vm3 = vmand %vm2629_vm5, %vm3918_vm13  ;;  %vm761_vm1 = vcmp.ge.s32.totalorder %v757_v16, 0  ;;  %v2734_v27 = vadd.s32 1, %v2482_v15 }
 0x157   :  { %v2744_v29 = vor.u32 %v1143_v18, %v1140_v17  ;;  %v2758_v30 = vadd.s32 1, %v2473_v1  ;;  %v3932_v38 = vmov 0  ;;  %v2811_v39 = vadd.s32 1, %v2489_v26 }
 0x158   :  { %3895 = vst [vmem:[#allocation9_spill] sm:$0xff] %v2568_v57  ;;  %2092 = vmatmul.mubr.msk.bf16.vlgmr.msra.gmra.mrb[0].mxu1 %vm3835_vm0, %v2568_v57  ;;  %vm2640_vm0 = vmand %vm2589_vm4, %vm3837_vm15  ;;  %vm1300_vm15 = vcmp.le.s32.totalorder %v1292_v5, 3  ;;  %vm1299_vm4 = vcmp.le.s32.totalorder %v1291_v10, 3  ;;  %v2830_v44 = vadd.s32 4294967295, %v2482_v15 }
 0x159   :  { %v3911_v8 = vsel %vm2640_vm0, 4294967295, %v3910_v8  ;;  %vm2679_vm6 = vmand %vm1296_vm14, %vm1300_vm15  ;;  %vm765_vm0 = vcmp.le.s32.totalorder %v757_v16, 3 }
 0x15a   :  { %vm1348_vm15 = vmpackc.low %vm2679_vm6, %vm2679_vm6  ;;  %vm3935_vm8 = vnez %v3911_v8 }
 0x15b   :  { %vm2700_vm13 = vmand %vm1295_vm2, %vm1299_vm4  ;;  %v2721_v23 = vsel %vm1348_vm15, 65537, %v3866_v58  ;;  %vm3924_vm4 = vcmp.le.s32.totalorder %v942_v61, 3 }
 0x15c   :  { %vm3923_vm2 = vmpackc.low %vm2596_vm7, %vm2596_vm7  ;;  %v1380_v32 = vshrl.u32 %v2721_v23, 16 }
 0x15d   :  { %v2718_v22 = vsel %vm3923_vm2, 65537, %v3866_v58  ;;  %vm2726_vm10 = vmand %vm2700_vm13, %vm3924_vm4  ;;  %vm3928_vm4 = vcmp.le.s32.totalorder %v943_v62, 3 }
 0x15e   :  { %vm3927_vm15 = vmpackc.low %vm2606_vm11, %vm2606_vm11  ;;  %v865_v49 = vshrl.u32 %v2718_v22, 16  ;;  %v2847_v50 = vrot.slane %v1380_v32, 7  ;;  %v868_v61 = vshll.u32 %v2718_v22, 16 }
 0x15f   :  { %v2742_v28 = vsel %vm3927_vm15, 65537, %v3866_v58  ;;  %vm2752_vm9 = vmand %vm2679_vm6, %vm3928_vm4  ;;  %vm3852_vm4 = vcmp.le.s32.totalorder %v2705_v21, 3 }
 0x160   :  { %vm3931_vm15 = vmpackc.low %vm2629_vm5, %vm2629_vm5  ;;  %v874_v53 = vshrl.u32 %v2742_v28, 16  ;;  %v2918_v55 = vrot.slane %v865_v49, 7  ;;  %v877_v54 = vshll.u32 %v2742_v28, 16  ;;  %v1340_v28 = vld [vmem:[#allocation3 + $0x14] sm:$0x1] }
 0x161   :  { %v1117_v31 = vsel %vm3931_vm15, 65537, %v3866_v58  ;;  %vm2766_vm2 = vmand %vm761_vm1, %vm765_vm0  ;;  %vm3939_vm1 = vnez %v3905_v25  ;;  %vm3956_vm15 = vsmask.f32 2304 }
 0x162   :  { %v3933_v38 = vsel %vm2766_vm2, 4294967295, %v3932_v38  ;;  %vm3936_vm11 = vmpackc.low %vm3935_vm8, %vm3935_vm8  ;;  %vm3941_vm8 = vnez %v3907_v41  ;;  %v1148_v42 = vshrl.u32 %v1117_v31, 16  ;;  %v1151_v43 = vshll.u32 %v1117_v31, 16 }
 0x163   :  { %3934 = vst [vmem:[#allocation12_spill] sm:$0xff] %v3933_v38  ;;  %v2779_v1 = vsel %vm3936_vm11, 65537, %v3866_v58  ;;  %vm2786_vm0 = vmand %vm2766_vm2, %vm3852_vm4  ;;  %v1387_v41 = vrot.slane %v2847_v50, 4  ;;  %v2931_v11 = vrot.slane %v874_v53, 7  ;;  %v2950_v17 = vor.u32 %v868_v61, %v2918_v55 }
 0x164   :  { %vm3940_vm5 = vmpackc.low %vm3939_vm1, %vm3939_vm1  ;;  %v3859_v45 = vrot.slane %v2779_v1, 6  ;;  %v1150_v62 = vrot.slane %v1148_v42, 5  ;;  %v1153_v63 = vrot.slane %v1151_v43, 6  ;;  %v1146_v31 = vrot.slane %v2744_v29, 4 }
 0x165   :  { %v2796_v34 = vsel %vm3940_vm5, 65537, %v3866_v58  ;;  %vm3942_vm11 = vmpackc.low %vm3941_vm8, %vm3941_vm8  ;;  %vm3946_vm5 = vcmp.ge.s32.totalorder %v2482_v15, 0  ;;  %3967 = vst [vmem:[#allocation13_spill] sm:$0xff] %v2931_v11 }
 0x166   :  { %v2804_v36 = vsel %vm3942_vm11, 65537, %v3866_v58  ;;  %vm3943_vm14 = vmmov %vm2652_vm12  ;;  %v3861_v47 = vrot.slane %v2796_v34, 7  ;;  %vm3949_vm11 = vcmp.ge.s32.totalorder %v2698_v19, 0  ;;  %v2922_v9 = vrot.slane %v3859_v45, 4 }
 0x167   :  { %vm3944_vm8 = vmpackc.low %vm3943_vm14, %vm3943_vm14  ;;  %v3860_v48 = vrot.slane %v2804_v36, 7  ;;  %v2952_v18 = vor.u32 %v1153_v63, %v1150_v62  ;;  %v3005_v63 = vor.u32 %v877_v54, %v2931_v11 }
 0x168   :  { %v2821_v40 = vsel %vm3944_vm8, 65537, %v3866_v58  ;;  %vm3945_vm8 = vcmp.le.s32.totalorder %v2482_v15, 3  ;;  %vm3954_vm1 = vmpackc.low %vm2686_vm3, %vm2686_vm3  ;;  %v2914_v5 = vrot.slane %v3861_v47, 4  ;;  %vm2965_vm3 = vcmp.ne.s16.totalorder %v1387_v41, 0  ;;  %v1444_v47 = vld [vmem:[#allocation3 + $0x14] sm:$0x1] }
 0x169   :  { %vm2840_vm4 = vmand %vm3946_vm5, %vm3945_vm8  ;;  %vm3952_vm5 = vnez %v3915_v12  ;;  %v2871_v52 = vsel %vm3954_vm1, 65537, %v3866_v58  ;;  %v3858_v59 = vrot.slane %v2821_v40, 6  ;;  %v2929_v10 = vrot.slane %v3860_v48, 4  ;;  %3969 = vst [vmem:[#allocation14_spill] sm:$0xff] %v2952_v18 }
 0x16a   :  { %vm2853_vm14 = vmand %vm2840_vm4, %vm3949_vm11  ;;  %vm3955_vm11 = vsmask.f32 6416  ;;  %v3855_v8 = vrot.slane %v2871_v52, 5  ;;  %v1397_v41 = vsel %vm2965_vm3, %v1340_v28, 0 }
 0x16b   :  { %vm3953_vm8 = vmpackc.low %vm3952_vm5, %vm3952_vm5  ;;  %vm3959_vm5 = vcmp.le.s32.totalorder %v2489_v26, 3  ;;  %v2947_v16 = vrot.slane %v3858_v59, 4  ;;  %v1976_v48 = vcombine.low %v1397_v41, %v1397_v41 }
 0x16c   :  { %v2863_v15 = vsel %vm3953_vm8, 65537, %v3866_v58  ;;  %vm2876_vm12 = vmor %vm3956_vm15, %vm3955_vm11  ;;  %vm3960_vm8 = vcmp.ge.s32.totalorder %v2489_v26, 0  ;;  %vm3964_vm11 = vcmp.ge.s32.totalorder %v2731_v35, 0  ;;  %v2991_v53 = vrot.slane %v3855_v8, 4 }
 0x16d   :  { %vm2885_vm7 = vmand %vm3960_vm8, %vm3959_vm5  ;;  %v3856_v7 = vrot.slane %v2863_v15, 5  ;;  %v3043_v28 = vsel %vm2876_vm12, %v1146_v31, %v2952_v18 }
 0x16e   :  { %vm3963_vm15 = vmpackc.low %vm2752_vm9, %vm2752_vm9  ;;  %3976 = vst [vmem:[#allocation15_spill] sm:$0xff] %v2991_v53 }
 0x16f   :  { %v2898_v25 = vsel %vm3963_vm15, 65537, %v3866_v58  ;;  %vm2904_vm5 = vmand %vm2885_vm7, %vm3964_vm11  ;;  %v2986_v43 = vrot.slane %v3856_v7, 4  ;;  %3988 = vst [vmem:[#allocation17_spill] sm:$0xff] %v3043_v28  ;;  %v4014_v28 = vmov 0  }
 0x170   :  { %vm1110_vm9 = vmpackc.low %vm2840_vm4, %vm2840_vm4  ;;  %v3857_v14 = vrot.slane %v2898_v25, 7 }
 0x171   :  { %vm3968_vm15 = vmpackc.low %vm2700_vm13, %vm2700_vm13  ;;  %v1114_v32 = vsel %vm1110_vm9, 65537, %v3866_v58  ;;  %vm3977_vm9 = vcmp.le.s32.totalorder %v2734_v27, 3 }
 0x172   :  { %v1351_v12 = vsel %vm3968_vm15, 65537, %v3866_v58  ;;  %vm1111_vm8 = vmpackc.low %vm2885_vm7, %vm2885_vm7  ;;  %v1467_v8 = vrot.slane %v3857_v14, 4  ;;  %v1119_v24 = vshrl.u32 %v1114_v32, 16  ;;  %v1122_v7 = vshll.u32 %v1114_v32, 16 }
 0x173   :  { %vm3970_vm15 = vmpackc.low %vm2766_vm2, %vm2766_vm2  ;;  %v1371_v61 = vshrl.u32 %v1351_v12, 16  ;;  %v1115_v62 = vsel %vm1111_vm8, 65537, %v3866_v58  ;;  %vm764_vm2 = vcmp.le.s32.totalorder %v2830_v44, 3  ;;  %v1374_v6 = vshll.u32 %v1351_v12, 16 }
 0x174   :  { %v2960_v22 = vsel %vm3970_vm15, 65537, %v3866_v58  ;;  %vm3973_vm15 = vcmp.le.s32.totalorder %v2705_v21, 3  ;;  %vm3981_vm8 = vmpackc.low %vm2726_vm10, %vm2726_vm10  ;;  %v1383_v32 = vshll.u32 %v2721_v23, 16  ;;  %v1128_v14 = vshrl.u32 %v1115_v62, 16 }
 0x175   :  { %vm2980_vm1 = vmand %vm2885_vm7, %vm3973_vm15  ;;  %vm3978_vm7 = vcmp.ge.s32.totalorder %v2734_v27, 0  ;;  %v3014_v27 = vsel %vm3981_vm8, 65537, %v3866_v58  ;;  %v856_v54 = vshrl.u32 %v2960_v22, 16  ;;  %v1131_v59 = vshll.u32 %v1115_v62, 16 }
 0x176   :  { %vm2998_vm15 = vmand %vm3978_vm7, %vm3977_vm9  ;;  %3982 = vst [vmem:[#allocation16_spill] sm:$0xff] %v3014_v27  ;;  %vm3983_vm9 = vcmp.le.s32.totalorder %v2811_v39, 3  ;;  %vm3984_vm7 = vcmp.ge.s32.totalorder %v2811_v39, 0  ;;  %v3049_v45 = vrot.slane %v1371_v61, 7  ;;  %v859_v31 = vshll.u32 %v2960_v22, 16 }
 0x177   :  { %vm3020_vm11 = vmand %vm3984_vm7, %vm3983_vm9  ;;  %v3065_v61 = vrot.slane %v856_v54, 7  ;;  %vm1472_vm7 = vcmp.ne.s16.totalorder %v1467_v8, 0  ;;  %v1121_v62 = vrot.slane %v1119_v24, 5  ;;  %v1124_v41 = vrot.slane %v1122_v7, 6 }
 0x178   :  { %vm1226_vm10 = vmpackc.low %vm2980_vm1, %vm2980_vm1  ;;  %3989 = vst [vmem:[#allocation18_spill] sm:$0xff] %v3049_v45  ;;  %v1130_v12 = vrot.slane %v1128_v14, 5  ;;  %v1133_v33 = vrot.slane %v1131_v59, 6  ;;  %v3104_v59 = vor.u32 %v1374_v6, %v3049_v45  ;;  %v3111_v37 = vor.u32 %v1383_v32, %v2847_v50  ;;  %v1949_v14 = vld [vmem:[%s3819_s5] ss:$0 sm:$0xff]  ;;  %s2224_s5 = smov 64  }
 0x179   :  { %vm3987_vm8 = vmpackc.low %vm2786_vm0, %vm2786_vm0  ;;  %v3101_v24 = vsel %vm1226_vm10, 65537, %v3866_v58  ;;  %vm968_vm10 = vcmask 1040384   ;;  %v3119_v42 = vsel %vm1472_vm7, %v1444_v47, 0  ;;  %vm4004_vm7 = vcmp.ge.s32.totalorder %v2830_v44, 0 }
 0x17a   :  { %v3038_v39 = vsel %vm3987_vm8, 65537, %v3866_v58  ;;  %vm1345_vm3 = vmpackc.low %vm2998_vm15, %vm2998_vm15  ;;  %3998 = vst [vmem:[#allocation19_spill] sm:$0xff] %v3104_v59  ;;  %v3133_v8 = vor.u32 %v1133_v33, %v1130_v12  ;;  %v4005_v47 = vmov 0  ;;  %v3148_v57 = vor.u32 %v859_v31, %v3065_v61  ;;  %v1950_v33 = vld [vmem:[%s3820_s6] ss:$0 sm:$0xff]  ;;  %s2217_s6 = smov 48  }
 0x17b   :  { %vm1346_vm0 = vmpackc.low %vm3020_vm11, %vm3020_vm11  ;;  %v3076_v51 = vsel %vm1345_vm3, 65537, %v3866_v58  ;;  %4000 = vst [vmem:[#allocation21_spill] sm:$0xff] %v3111_v37  ;;  %vm969_vm3 = vcmask 1044484   ;;  %v3150_v4 = vor.u32 %v1124_v41, %v1121_v62  ;;  %v4075_v60 = vrot.slane %v3065_v61, 4 }
 0x17c   :  { %vm3990_vm9 = vmpackc.low %vm2853_vm14, %vm2853_vm14  ;;  %vm3992_vm14 = vcmp.le.s32.totalorder %v2758_v30, 3  ;;  %v1350_v26 = vsel %vm1346_vm0, 65537, %v3866_v58  ;;  %v1354_v2 = vshrl.u32 %v3076_v51, 16  ;;  %4001 = vst [vmem:[#allocation22_spill] sm:$0xff] %v3119_v42 }
 0x17d   :  { %v3062_v23 = vsel %vm3990_vm9, 65537, %v3866_v58  ;;  %vm3991_vm8 = vmpackc.low %vm2904_vm5, %vm2904_vm5  ;;  %vm3995_vm5 = vcmp.le.s32.totalorder %v2705_v21, 3  ;;  %v3107_v21 = vshll.u32 %v1976_v48, 16  ;;  %v4002_v48 = vrot.slane %v3014_v27, 7 }
 0x17e   :  { %v3073_v22 = vsel %vm3991_vm8, 65537, %v3866_v58  ;;  %vm3082_vm9 = vmand %vm2998_vm15, %vm3992_vm14  ;;  %v1362_v32 = vshrl.u32 %v1350_v26, 16  ;;  %v4013_v54 = vrot.slane %v3062_v23, 6  ;;  %v3179_v38 = vrot.slane %v1354_v2, 7 }
 0x17f   :  { %vm3091_vm8 = vmand %vm3020_vm11, %vm3995_vm5  ;;  %3999 = vst [vmem:[#allocation20_spill] sm:$0xff] %v3107_v21  ;;  %v3123_v6 = vrot.slane %v4002_v48, 4  ;;  %v4008_v48 = vrot.slane %v3038_v39, 7  ;;  %v1365_v18 = vshll.u32 %v1350_v26, 16  ;;  %v4016_v41 = vrot.slane %v3073_v22, 6 }
 0x180   :  { %vm1449_vm1 = vmpackc.low %vm3082_vm9, %vm3082_vm9  ;;  %v3193_v45 = vrot.slane %v1362_v32, 7  ;;  %v4021_v26 = vrot.slane %v3101_v24, 5 }
 0x181   :  { %4003 = vst [vmem:[#allocation23_spill] sm:$0xff] %v3123_v6  ;;  %vm1450_vm0 = vmpackc.low %vm3091_vm8, %vm3091_vm8  ;;  %v3145_v50 = vrot.slane %v4008_v48, 4  ;;  %v3161_v44 = vsel %vm1449_vm1, 65537, %v3866_v58  ;;  %v3177_v58 = vrot.slane %v4013_v54, 4  ;;  %v3191_v42 = vrot.slane %v4016_v41, 4 }
 0x182   :  { %vm3139_vm14 = vmand %vm4004_vm7, %vm764_vm2  ;;  %4009 = vst [vmem:[#allocation25_spill] sm:$0xff] %v3161_v44  ;;  %vm4010_vm2 = vcmp.le.s32.totalorder %v2758_v30, 3  ;;  %v3187_v12 = vsel %vm1450_vm0, 65537, %v4014_v28  ;;  %v3205_v7 = vrot.slane %v4021_v26, 4  ;;  %v3220_v53 = vor.u32 %v1365_v18, %v3193_v45 }
 0x183   :  { %v4006_v47 = vsel %vm3139_vm14, 4294967295, %v4005_v47  ;;  %vm3167_vm5 = vmand %vm3139_vm14, %vm4010_vm2  ;;  %4015 = vst [vmem:[#allocation26_spill] sm:$0xff] %v3187_v12  ;;  %vm747_vm0 = vcmask 59392  }
 0x184   :  { %4007 = vst [vmem:[#allocation24_spill] sm:$0xff] %v4006_v47  ;;  %4017 = vst [vmem:[#allocation27_spill] sm:$0xff] %v3193_v45 }
 0x185   :  { %vm4018_vm9 = vmmov %vm4010_vm2  ;;  %4022 = vst [vmem:[#allocation28_spill] sm:$0xff] %v3220_v53 }
 0x186   :  { %vm3199_vm1 = vmand %vm2840_vm4, %vm4018_vm9  ;;  %vm1234_vm9 = vcmask 1046532  }
 0x187   :  { %vm960_vm7 = vmpackc.low %vm3167_vm5, %vm3167_vm5 }
 0x188   :  { %vm836_vm4 = vmpackc.low %vm3139_vm14, %vm3139_vm14  ;;  %v4087_v56 = vld [vmem:[#allocation23_spill] sm:$0xff] }
 0x189   :  { %vm1225_vm8 = vmpackc.low %vm3199_vm1, %vm3199_vm1 }
 0x18a   :  { %vm3252_vm5 = vmor %vm968_vm10, %vm969_vm3  ;;  %vm4029_vm10 = vsmask.f32 7946  ;;  %vm4030_vm3 = vcmask 60418  }
 0x18b   :  { %vm3276_vm1 = vmand %vm4030_vm3, %vm4029_vm10  ;;  %vm4038_vm10 = vcmask 1045508   ;;  %vm4039_vm3 = vcmask 1041408  }
 0x22b   :  { %v2093_v48 = vpop.f32.mrb[0].mxu1 }
 0x22c   :  { %v654_v62 = vmul.f32 %v2093_v48, %v1949_v14  ;;  %v630_v21 = vpop.f32.mrb[1].mxu1 }
 0x22d   :  { %v652_v48 = vmul.f32 %v1949_v14, %v630_v21  ;;  %v2094_v54 = vpop.f32.mrb[2].mxu1  ;;  %v3878_v21 = vrot.slane %v3187_v12, 7 }
 0x22e   :  { %v665_v32 = vadd.f32 %v1950_v33, %v654_v62  ;;  %v655_v37 = vmul.f32 %v2094_v54, %v1949_v14  ;;  %v633_v11 = vpop.f32.mrb[3].mxu1 }
 0x22f   :  { %v663_v41 = vadd.f32 %v1950_v33, %v652_v48  ;;  %v653_v27 = vmul.f32 %v1949_v14, %v633_v11  ;;  %v3232_v11 = vsel %vm960_vm7, 65537, %v4014_v28  ;;  %v4023_v48 = vrot.slane %v3161_v44, 7  ;;  %vm3297_vm7 = vmor %vm4039_vm3, %vm4038_vm10 }
 0x230   :  { %v669_v62 = vmax.f32 %v665_v32, 0.0  ;;  %v666_v54 = vadd.f32 %v1950_v33, %v655_v37  ;;  %v3244_v37 = vsel %vm836_vm4, 65537, %v4014_v28  ;;  %vm4043_vm4 = vsmask.f32 2304 }
 0x231   :  { %v667_v18 = vmax.f32 %v663_v41, 0.0  ;;  %v664_v14 = vadd.f32 %v1950_v33, %v653_v27  ;;  %v3236_v59 = vrot.slane %v4023_v48, 4  ;;  %v3248_v41 = vrot.slane %v3878_v21, 4  ;;  %vm3307_vm2 = vmand %vm747_vm0, %vm4043_vm4 }
 0x232   :  { %v2004_v31 = vpack.c.bf16 %v669_v62, %v669_v62  ;;  %v670_v32 = vmax.f32 %v666_v54, 0.0  ;;  %v3262_v33 = vsel %vm1225_vm8, 65537, %v4014_v28  ;;  %v4028_v21 = vrot.slane %v2796_v34, 7 }
 0x233   :  { %4024 = vst [vmem:[#allocation29_spill] sm:$0xff] %v3236_v59  ;;  %4025 = vst [vmem:[#allocation30_spill] sm:$0xff] %v3248_v41  ;;  %v2002_v62 = vpack.c.bf16 %v667_v18, %v667_v18  ;;  %v668_v54 = vmax.f32 %v664_v14, 0.0  ;;  %v848_v2 = vshrl.u32 %v3244_v37, 16  ;;  %vm4046_vm3 = vcmask 1042432  }
 0x234   :  { %v3270_v26 = vsel %vm3252_vm5, %v3145_v50, %v4028_v21  ;;  %v714_v46 = vshrl.u32 %v2004_v31, 16  ;;  %v717_v30 = vshll.u32 %v2004_v31, 16  ;;  %v2005_v47 = vpack.c.bf16 %v670_v32, %v670_v32  ;;  %v741_v31 = vld [vmem:[#allocation3] sm:$0xc] }
 0x235   :  { %v695_v28 = vshrl.u32 %v2002_v62, 16  ;;  %v698_v44 = vshll.u32 %v2002_v62, 16  ;;  %v2003_v59 = vpack.c.bf16 %v668_v54, %v668_v54  ;;  %v850_v54 = vrot.slane %v848_v2, 7 }
 0x236   :  { %v716_v14 = vrot.slane %v714_v46, 5  ;;  %v719_v12 = vrot.slane %v717_v30, 6  ;;  %v724_v48 = vshrl.u32 %v2005_v47, 16  ;;  %v727_v53 = vshll.u32 %v2005_v47, 16 }
 0x237   :  { %v697_v34 = vrot.slane %v695_v28, 5  ;;  %v700_v41 = vrot.slane %v698_v44, 6  ;;  %v704_v45 = vshrl.u32 %v2003_v59, 16  ;;  %v707_v6 = vshll.u32 %v2003_v59, 16 }
 0x238   :  { %v720_v50 = vor.u32 %v719_v12, %v716_v14  ;;  %v726_v32 = vrot.slane %v724_v48, 5  ;;  %v729_v62 = vrot.slane %v727_v53, 6  ;;  %v4033_v47 = vrot.slane %v2804_v36, 7  ;;  %v749_v14 = vld [vmem:[#allocation3 + $0x10] sm:$0x7] }
 0x239   :  { %v701_v18 = vor.u32 %v700_v41, %v697_v34  ;;  %v706_v46 = vrot.slane %v704_v45, 5  ;;  %v709_v30 = vrot.slane %v707_v6, 6  ;;  %v4034_v44 = vrot.slane %v3062_v23, 6 }
 0x23a   :  { %v3285_v59 = vsel %vm3252_vm5, %v2914_v5, %v4033_v47  ;;  %v722_v28 = vrot.slane %v720_v50, 4  ;;  %v730_v48 = vor.u32 %v729_v62, %v726_v32  ;;  %v4037_v53 = vrot.slane %v3232_v11, 7 }
 0x23b   :  { %vm3289_vm8 = vcmp.ne.s16.totalorder %v4034_v44, 0  ;;  %v4042_v45 = vrot.slane %v3262_v33, 5  ;;  %v702_v6 = vrot.slane %v701_v18, 4  ;;  %v742_v23 = vsel %vm3276_vm1, %v701_v18, %v741_v31  ;;  %vm3317_vm1 = vmor %vm4046_vm3, %vm1234_vm9 }
 0x23c   :  { %v972_v41 = vrot.slane %v4037_v53, 4  ;;  %v710_v34 = vor.u32 %v709_v30, %v706_v46  ;;  %v851_v32 = vshll.u32 %v3244_v37, 16  ;;  %743 = vst [vmem:[#allocation3] sm:$0xc] %v742_v23  ;;  %v731_v62 = vsel %vm2876_vm12, %v722_v28, %v730_v48 }
 0x23d   :  { %v1237_v5 = vrot.slane %v4042_v45, 4  ;;  %v732_v47 = vrot.slane %v730_v48, 4  ;;  %v854_v21 = vrot.slane %v850_v54, 4  ;;  %vm4049_vm0 = vcmask 60416  }
 0x23e   :  { %746 = vst.msk [vmem:[#allocation3 + $0xc] sm:$0xf] %vm4049_vm0, %v731_v62  ;;  %v711_v31 = vsel %vm2876_vm12, %v702_v6, %v710_v34  ;;  %v712_v37 = vrot.slane %v710_v34, 4  ;;  %v4050_v46 = vrot.slane %v3073_v22, 6  ;;  %v4051_v44 = vrot.slane %v2779_v1, 6 }
 0x23f   :  { %vm4052_vm9 = vsmask.f32 4368  ;;  %vm4053_vm3 = vsmask.f32 256  ;;  %v750_v22 = vsel %vm3307_vm2, %v732_v47, %v749_v14  ;;  %vm4056_vm4 = vcmask 60416  }
 0x240   :  { %v3330_v30 = vsel %vm3297_vm7, %v3177_v58, %v4050_v46  ;;  %v3337_v28 = vsel %vm3297_vm7, %v3191_v42, %v4051_v44  ;;  %vm3341_vm0 = vmor %vm4053_vm3, %vm4052_vm9  ;;  %744 = vst.msk [vmem:[#allocation3 + $0x4] sm:$0xf] %vm4056_vm4, %v711_v31  ;;  %vm4057_vm10 = vcmp.ge.s32.totalorder %v2594_v0, 0  ;;  %v4060_v1 = vrot.slane %v3038_v39, 7  ;;  %v4089_v31 = vld [vmem:[#allocation15_spill] sm:$0xff]  ;;  %v4093_v58 = vld [vmem:[#allocation16_spill] sm:$0xff] }
 0x241   :  { %vm3352_vm14 = vmand %vm2700_vm13, %vm4057_vm10  ;;  %v4061_v53 = vrot.slane %v2821_v40, 6  ;;  %v4062_v6 = vrot.slane %v2863_v15, 5  ;;  %751 = vst [vmem:[#allocation3 + $0x10] sm:$0x7] %v750_v22  ;;  %v721_v39 = vsel %vm2876_vm12, %v712_v37, %v720_v50  ;;  %vm4063_vm13 = vcmp.ge.s32.totalorder %v2601_v3, 0  ;;  %v4090_v37 = vld [vmem:[#allocation19_spill] sm:$0xff] }
 0x242   :  { %v974_v42 = vsel %vm3252_vm5, %v972_v41, %v4060_v1  ;;  %vm3380_vm2 = vmand %vm2679_vm6, %vm4063_vm13  ;;  %v4066_v15 = vrot.slane %v3101_v24, 5  ;;  %v3398_v13 = vor.u32 %v851_v32, %v850_v54  ;;  %vm4069_vm10 = vcmp.ge.s32.totalorder %v2698_v19, 0  ;;  %v4091_v46 = vld [vmem:[#allocation27_spill] sm:$0xff]  ;;  %v4104_v24 = vld [vmem:[#allocation28_spill] sm:$0xff] }
 0x243   :  { %v3365_v45 = vsel %vm3297_vm7, %v2922_v9, %v4061_v53  ;;  %v3372_v20 = vsel %vm3317_vm1, %v3205_v7, %v4062_v6  ;;  %v4067_v7 = vrot.slane %v2871_v52, 5  ;;  %vm4068_vm6 = vmmov %vm4056_vm4  ;;  %v4072_v41 = vrot.slane %v3232_v11, 7  ;;  %v935_v61 = vld [vmem:[#allocation3] sm:$0xe] }
 0x244   :  { %v3389_v9 = vsel %vm3317_vm1, %v1237_v5, %v4066_v15  ;;  %745 = vst.msk [vmem:[#allocation3 + $0x8] sm:$0xf] %vm4068_vm6, %v721_v39  ;;  %vm3405_vm4 = vmand %vm2998_vm15, %vm4069_vm10  ;;  %v3433_v11 = vsel %vm3341_vm0, %v4075_v60, %v2950_v17  ;;  %vm4076_vm3 = vcmp.ge.s32.totalorder %v2731_v35, 0  ;;  %v4079_v54 = vrot.slane %v3262_v33, 5  ;;  %v1020_v33 = vld [vmem:[#allocation3] sm:$0xc] }
 0x245   :  { %v3396_v50 = vsel %vm3317_vm1, %v2986_v43, %v4067_v7  ;;  %vm3411_vm9 = vcmp.ne.s16.totalorder %v4072_v41, 0  ;;  %v3420_v43 = vsel %vm3341_vm0, %v854_v21, %v3148_v57  ;;  %vm1311_vm15 = vmpackc.low %vm3352_vm14, %vm3352_vm14  ;;  %vm1248_vm7 = vcmp.ne.s16.totalorder %v3389_v9, 0  ;;  %v1287_v2 = vld [vmem:[#allocation3 + $0xc] sm:$0xf]  ;;  %v1216_v21 = vld [vmem:[#allocation3] sm:$0x8] }
 0x246   :  { %vm3439_vm1 = vmand %vm3020_vm11, %vm4076_vm3  ;;  %vm3445_vm10 = vcmp.ne.s16.totalorder %v4079_v54, 0  ;;  %vm1250_vm13 = vcmp.ne.s16.totalorder %v3396_v50, 0  ;;  %v4082_v17 = vrot.slane %v2918_v55, 4  ;;  %v4083_v5 = vrot.slane %v3150_v4, 4  ;;  %v938_v32 = vld [vmem:[#allocation3 + $0xc] sm:$0xf] }
 0x247   :  { %vm1309_vm11 = vmpackc.low %vm3405_vm4, %vm3405_vm4  ;;  %v4085_v14 = vshll.u32 %v3076_v51, 16  ;;  %v987_v62 = vsel %vm3411_vm9, %v935_v61, 0  ;;  %v1315_v51 = vsel %vm1311_vm15, %v1287_v2, 0  ;;  %v1285_v18 = vld [vmem:[#allocation3 + $0x4] sm:$0xf]  ;;  %vm4088_vm9 = vcmp.ne.s16.totalorder %v3285_v59, 0 }
 0x248   :  { %v3456_v49 = vsel %vm3341_vm0, %v4082_v17, %v3005_v63  ;;  %v3468_v55 = vsel %vm2876_vm12, %v4083_v5, %v3133_v8  ;;  %v4084_v63 = vrot.slane %v3133_v8, 4  ;;  %vm1312_vm3 = vmpackc.low %vm3380_vm2, %vm3380_vm2  ;;  %v1068_v8 = vsel %vm3289_vm8, %v1020_v33, 0  ;;  %v936_v12 = vld [vmem:[#allocation3 + $0x4] sm:$0xf]  ;;  %v4095_v53 = vld [vmem:[#allocation30_spill] sm:$0xff] }
 0x249   :  { %v3483_v34 = vor.u32 %v4085_v14, %v3179_v38  ;;  %vm1310_vm8 = vmpackc.low %vm3439_vm1, %vm3439_vm1  ;;  %vm1251_vm6 = vcmp.ne.s16.totalorder %v4089_v31, 0  ;;  %v4092_v44 = vrot.slane %v4091_v46, 4  ;;  %v4094_v1 = vrot.slane %v4093_v58, 7  ;;  %v1288_v59 = vld [vmem:[#allocation3 + $0x10] sm:$0xf]  ;;  %v4102_v17 = vld [vmem:[#allocation18_spill] sm:$0xff] }
 0x24a   :  { %v3475_v23 = vsel %vm2876_vm12, %v4084_v63, %v2744_v29  ;;  %v4086_v29 = vrot.slane %v2898_v25, 7  ;;  %v990_v25 = vsel %vm4088_vm9, %v938_v32, 0  ;;  %vm885_vm12 = vcmp.ne.s16.totalorder %v3456_v49, 0  ;;  %v1021_v7 = vld [vmem:[#allocation3 + $0x4] sm:$0xf]  ;;  %v4097_v41 = vld [vmem:[#allocation13_spill] sm:$0xff] }
 0x24b   :  { %v3514_v22 = vsel %vm3341_vm0, %v4092_v44, %v4090_v37  ;;  %v3521_v6 = vsel %vm3252_vm5, %v4095_v53, %v4094_v1  ;;  %v1313_v39 = vsel %vm1309_vm11, %v1285_v18, 0  ;;  %vm4096_vm14 = vcmp.ne.s16.totalorder %v974_v42, 0  ;;  %v4101_v54 = vld [vmem:[#allocation21_spill] sm:$0xff]  ;;  %v1286_v2 = vld [vmem:[#allocation3 + $0x8] sm:$0xf] }
 0x24c   :  { %v3495_v47 = vsel %vm3252_vm5, %v4087_v56, %v4086_v29  ;;  %v988_v15 = vsel %vm4096_vm14, %v936_v12, 0  ;;  %vm1270_vm15 = vcmask 1044480   ;;  %v4098_v52 = vrot.slane %v4097_v41, 4  ;;  %v937_v14 = vld [vmem:[#allocation3 + $0x8] sm:$0xf]  ;;  %v4107_v56 = vld [vmem:[#allocation26_spill] sm:$0xff] }
 0x24d   :  { %v4103_v61 = vrot.slane %v4102_v17, 4  ;;  %v4105_v5 = vrot.slane %v3179_v38, 4  ;;  %v1316_v63 = vsel %vm1312_vm3, %v1288_v59, 0  ;;  %v1960_v32 = vcombine.low %v987_v62, %v988_v15  ;;  %v4109_v12 = vld [vmem:[#allocation29_spill] sm:$0xff]  ;;  %v1022_v37 = vld [vmem:[#allocation3 + $0x8] sm:$0xf] }
 0x24e   :  { %vm3531_vm9 = vcmp.ne.s16.totalorder %v4098_v52, 0  ;;  %vm4106_vm4 = vcmp.ne.s16.totalorder %v3330_v30, 0  ;;  %v4108_v18 = vrot.slane %v4107_v56, 7  ;;  %v1973_v48 = vcombine.low %v1315_v51, %v1316_v63  ;;  %v1023_v30 = vld [vmem:[#allocation3 + $0xc] sm:$0xf]  ;;  %v4114_v52 = vld [vmem:[#allocation17_spill] sm:$0xff] }
 0x24f   :  { %v3540_v33 = vsel %vm3341_vm0, %v4103_v61, %v4101_v54  ;;  %v3547_v42 = vsel %vm3341_vm0, %v4105_v5, %v4104_v24  ;;  %v1069_v29 = vsel %vm4106_vm4, %v1021_v7, 0  ;;  %v1314_v40 = vsel %vm1310_vm8, %v1286_v2, 0  ;;  %v939_v1 = vld [vmem:[#allocation3 + $0x10] sm:$0x1]  ;;  %v1217_v53 = vld [vmem:[#allocation3 + $0x4] sm:$0xf] }
 0x250   :  { %v3561_v38 = vsel %vm3252_vm5, %v4109_v12, %v4108_v18  ;;  %vm4110_vm0 = vcmp.ne.s16.totalorder %v3270_v26, 0  ;;  %v1963_v46 = vcombine.low %v1068_v8, %v1069_v29  ;;  %vm1390_vm2 = vcmp.ne.s16.totalorder %v3514_v22, 0  ;;  %1329 = vrot.lane.b32.xlu1 %v1973_v48, %s2217_s6  ;;  %v1219_v7 = vld [vmem:[#allocation3 + $0xc] sm:$0xf]  ;;  %v815_v17 = vld [vmem:[#allocation3] sm:$0xf] }
 0x251   :  { %v989_v62 = vsel %vm4110_vm0, %v937_v14, 0  ;;  %v1972_v44 = vcombine.low %v1313_v39, %v1314_v40  ;;  %v1006_v27 = vrot.slane %v1960_v32, 1  ;;  %vm4111_vm5 = vcmp.ne.s16.totalorder %v3337_v28, 0  ;;  %v816_v63 = vld [vmem:[#allocation3 + $0x4] sm:$0xf]  ;;  %v4118_v14 = vld [vmem:[#allocation14_spill] sm:$0xff] }
 0x252   :  { %v1961_v58 = vcombine.low %v989_v62, %v990_v25  ;;  %v1070_v51 = vsel %vm4111_vm5, %v1022_v37, 0  ;;  %vm1391_vm11 = vcmp.ne.s16.totalorder %v3540_v33, 0  ;;  %vm1157_vm1 = vcmp.ne.s16.totalorder %v3150_v4, 0  ;;  %v1218_v25 = vld [vmem:[#allocation3 + $0x8] sm:$0xf] }
 0x253   :  { %vm4112_vm3 = vcmp.ne.s16.totalorder %v3365_v45, 0  ;;  %v1087_v57 = vrot.slane %v1963_v46, 2  ;;  %vm4113_vm8 = vcmp.ne.s16.totalorder %v2929_v10, 0  ;;  %v1252_v28 = vsel %vm3445_vm10, %v1216_v21, 0  ;;  %1327 = vrot.lane.b32.xlu0 %v1972_v44, %s2217_s6  ;;  %v1024_v45 = vld [vmem:[#allocation3 + $0x10] sm:$0x3] }
 0x254   :  { %v1071_v26 = vsel %vm4112_vm3, %v1023_v30, 0  ;;  %v991_v8 = vsel %vm4113_vm8, %v939_v1, 0  ;;  %vm1158_vm14 = vcmp.ne.s16.totalorder %v3468_v55, 0  ;;  %v1007_v59 = vrot.slane %v1961_v58, 1  ;;  %v817_v2 = vld [vmem:[#allocation3 + $0x8] sm:$0xf] }
 0x255   :  { %v1964_v39 = vcombine.low %v1070_v51, %v1071_v26  ;;  %v1962_v15 = vcombine.low %v991_v8, %v991_v8  ;;  %v1253_v41 = vsel %vm1248_vm7, %v1217_v53, 0  ;;  %vm1159_vm4 = vcmp.ne.s16.totalorder %v3475_v23, 0  ;;  %v818_v29 = vld [vmem:[#allocation3 + $0xc] sm:$0xf]  ;;  %v1220_v37 = vld [vmem:[#allocation3 + $0x10] sm:$0x7] }
 0x256   :  { %vm4115_vm5 = vcmp.ne.s16.totalorder %v3372_v20, 0  ;;  %v1255_v36 = vsel %vm1250_vm13, %v1219_v7, 0  ;;  %v1969_v21 = vcombine.low %v1252_v28, %v1253_v41  ;;  %vm4116_vm10 = vcmp.ne.s16.totalorder %v2947_v16, 0  ;;  %v819_v30 = vld [vmem:[#allocation3 + $0x10] sm:$0x1] }
 0x257   :  { %v1254_v10 = vsel %vm4115_vm5, %v1218_v25, 0  ;;  %v1072_v54 = vsel %vm4116_vm10, %v1024_v45, 0  ;;  %vm4117_vm3 = vcmask 1046528   ;;  %v1088_v9 = vrot.slane %v1964_v39, 2  ;;  %v1338_v58 = vld [vmem:[#allocation3 + $0xc] sm:$0xf] }
 0x258   :  { %v1008_v61 = vsel %vm4117_vm3, %v1006_v27, %v1007_v59  ;;  %v1009_v24 = vrot.slane %v1962_v15, 1  ;;  %v1970_v5 = vcombine.low %v1254_v10, %v1255_v36  ;;  %v4119_v32 = vrot.slane %v4118_v14, 4  ;;  %v1339_v53 = vld [vmem:[#allocation3 + $0x10] sm:$0xf]  ;;  %v1101_v26 = vld [vmem:[#allocation3] sm:$0xc] }
 0x259   :  { %1011 = vrot.lane.b32.xlu1 %v1008_v61, %s2218_s30  ;;  %v1271_v16 = vrot.slane %v1969_v21, 3  ;;  %v1965_v50 = vcombine.low %v1072_v54, %v1072_v54  ;;  %vm4122_vm5 = vcmp.ne.s16.totalorder %v3398_v13, 0  ;;  %vm4123_vm10 = vcmp.ne.s16.totalorder %v3420_v43, 0  ;;  %v1102_v28 = vld [vmem:[#allocation3 + $0x4] sm:$0xf]  ;;  %v4128_v54 = vld [vmem:[#allocation25_spill] sm:$0xff] }
 0x25a   :  { %vm3595_vm8 = vcmp.ne.s16.totalorder %v4119_v32, 0  ;;  %v887_v56 = vsel %vm4122_vm5, %v815_v17, 0  ;;  %v888_v18 = vsel %vm4123_vm10, %v816_v63, 0  ;;  %vm4124_vm3 = vcmask 1045504   ;;  %v1104_v41 = vld [vmem:[#allocation3 + $0xc] sm:$0xf] }
 0x25b   :  { %v1089_v12 = vsel %vm4124_vm3, %v1087_v57, %v1088_v9  ;;  %vm4125_vm7 = vcmask 1046528   ;;  %v1272_v40 = vrot.slane %v1970_v5, 3  ;;  %vm4126_vm0 = vcmp.ne.s16.totalorder %v3433_v11, 0  ;;  %v2184_v57 = vld [vmem:[%s3821_s7] sm:$0xff]   ;;  %v1105_v4 = vld [vmem:[#allocation3 + $0x10] sm:$0x7] }
 0x25c   :  { %v1010_v48 = vsel %vm4125_vm7, %v1007_v59, %v1009_v24  ;;  %v889_v62 = vsel %vm4126_vm0, %v817_v2, 0  ;;  %vm1389_vm13 = vcmp.ne.s16.totalorder %v3547_v42, 0  ;;  %1092 = vrot.lane.b32.xlu0 %v1089_v12, %s2219_s0  ;;  %v1090_v13 = vrot.slane %v1965_v50, 2  ;;  %v1103_v59 = vld [vmem:[#allocation3 + $0x8] sm:$0xf]  ;;  %2095 = vmatprep.subr.bf16.mxu1 %v2184_v57 }
 0x25d   :  { %v890_v43 = vsel %vm885_vm12, %v818_v29, 0  ;;  %v1957_v46 = vcombine.low %v887_v56, %v888_v18  ;;  %v1256_v44 = vsel %vm1251_vm6, %v1220_v37, 0  ;;  %v1273_v27 = vsel %vm1270_vm15, %v1271_v16, %v1272_v40  ;;  %1013 = vrot.lane.b32.xlu1 %v1010_v48, %s2218_s30  ;;  %vm4127_vm12 = vmmov %vm4124_vm3  ;;  %2096 = vmatpush3.bf16.msra.mxu1 %v2184_v57  ;;  %v1336_v5 = vld [vmem:[#allocation3 + $0x4] sm:$0xf]  ;;  %v2185_v16 = vld [vmem:[%s3821_s7 + $0x8] sm:$0xff]  }
 0x25e   :  { %v1958_v11 = vcombine.low %v889_v62, %v890_v43  ;;  %v1971_v51 = vcombine.low %v1256_v44, %v1256_v44  ;;  %v891_v1 = vsel %vm3531_vm9, %v819_v30, 0  ;;  %v1091_v49 = vsel %vm4127_vm12, %v1088_v9, %v1090_v13  ;;  %v1337_v18 = vld [vmem:[#allocation3 + $0x8] sm:$0xf]  ;;  %2097 = vmatprep.subr.bf16.mxu1 %v2185_v16 }
 0x25f   :  { %v907_v8 = vshrl.u32 %v1957_v46, 16  ;;  %v909_v31 = vshll.u32 %v1957_v46, 16  ;;  %v1959_v25 = vcombine.low %v891_v1, %v891_v1  ;;  %v1395_v60 = vsel %vm1390_vm2, %v1338_v58, 0 }
 0x260   :  { %v914_v39 = vshll.u32 %v1958_v11, 16  ;;  %v1274_v15 = vrot.slane %v1971_v51, 3  ;;  %v918_v7 = vshrl.u32 %v1958_v11, 16  ;;  %vm1470_vm6 = vcmp.ne.s16.totalorder %v3521_v6, 0  ;;  %1276 = vrot.lane.b32.xlu0 %v1273_v27, %s2220_s20  ;;  %v1443_v27 = vld [vmem:[#allocation3 + $0x10] sm:$0xf] }
 0x261   :  { %v911_v45 = vrot.slane %v909_v31, 1  ;;  %v922_v10 = vshll.u32 %v1959_v25, 16  ;;  %v1396_v36 = vsel %vm1391_vm11, %v1339_v53, 0  ;;  %v1162_v21 = vsel %vm1157_vm1, %v1101_v26, 0  ;;  %1094 = vrot.lane.b32.xlu1 %v1091_v49, %s2219_s0  ;;  %2098 = vmatpush3.bf16.msra.mxu1 %v2185_v16  ;;  %v4142_v11 = vld [vmem:[#allocation12_spill] sm:$0xff] }
 0x262   :  { %vm1471_vm9 = vcmp.ne.s16.totalorder %v3495_v47, 0  ;;  %v4129_v22 = vrot.slane %v4128_v54, 7  ;;  %vm1469_vm0 = vcmp.ne.s16.totalorder %v3561_v38, 0  ;;  %v916_v61 = vrot.slane %v914_v39, 1  ;;  %v1440_v49 = vld [vmem:[#allocation3 + $0x4] sm:$0xe] }
 0x263   :  { %v1275_v9 = vsel %vm1270_vm15, %v1272_v40, %v1274_v15  ;;  %v1975_v24 = vcombine.low %v1395_v60, %v1396_v36  ;;  %v1163_v33 = vsel %vm1158_vm14, %v1102_v28, 0  ;;  %vm1180_vm11 = vsmask.f32 5376  ;;  %v4147_v28 = vld [vmem:[#allocation10_spill] sm:$0xff]  ;;  %v4151_v15 = vld [vmem:[#allocation20_spill] sm:$0xff] }
 0x264   :  { %vm3632_vm2 = vcmp.ne.s16.totalorder %v4129_v22, 0  ;;  %v912_v63 = vor.u32 %v911_v45, %v907_v8  ;;  %v924_v2 = vrot.slane %v922_v10, 1  ;;  %v1164_v14 = vsel %vm1159_vm4, %v1103_v59, 0  ;;  %v1441_v8 = vld [vmem:[#allocation3 + $0x8] sm:$0xf]  ;;  %v2187_v39 = vld [vmem:[%s3821_s7 + $0x18] sm:$0xff]  }
 0x265   :  { %vm4132_vm1 = vcmp.ne.s16.totalorder %v4114_v52, 0  ;;  %v920_v50 = vor.u32 %v918_v7, %v916_v61  ;;  %v1419_v55 = vshll.u32 %v1975_v24, 16  ;;  %v1423_v29 = vshrl.u32 %v1975_v24, 16  ;;  %v4136_v52 = vld [vmem:[#allocation24_spill] sm:$0xff]  ;;  %1278 = vrot.lane.b32.xlu1 %v1275_v9, %s2220_s20  ;;  %v752_v9 = vld [vmem:[#allocation3] sm:$0xf] }
 0x266   :  { %v1165_v32 = vsel %vm4132_vm1, %v1104_v41, 0  ;;  %v1966_v56 = vcombine.low %v1162_v21, %v1163_v33  ;;  %vm4133_vm15 = vsmask.f32 7424  ;;  %v1166_v40 = vsel %vm3595_vm8, %v1105_v4, 0  ;;  %v755_v16 = vld [vmem:[#allocation3 + $0xc] sm:$0xf] }
 0x267   :  { %v917_v12 = vsel %vm4133_vm15, %v912_v63, %v916_v61  ;;  %v1967_v48 = vcombine.low %v1164_v14, %v1165_v32  ;;  %vm4134_vm14 = vcmp.ne.s16.totalorder %v3483_v34, 0  ;;  %vm4135_vm4 = vcmp.ge.s32.totalorder %v2698_v19, 0  ;;  %vm4140_vm10 = vmmov %vm4133_vm15  ;;  %v1442_v34 = vld [vmem:[#allocation3 + $0xc] sm:$0xf]  ;;  %v2186_v19 = vld [vmem:[%s3821_s7 + $0x10] sm:$0xff]  }
 0x268   :  { %v1393_v23 = vsel %vm4134_vm14, %v1336_v5, 0  ;;  %vm4137_vm7 = vnez %v4136_v52  ;;  %926 = vrot.lane.b32.xlu0 %v917_v12, %s2221_s2  ;;  %v925_v37 = vsel %vm4140_vm10, %v920_v50, %v924_v2  ;;  %v3663_v30 = vrot.slane %v1419_v55, 1  ;;  %2099 = vmatprep.subr.bf16.mxu1 %v2186_v19  ;;  %v753_v5 = vld [vmem:[#allocation3 + $0x4] sm:$0xf]  ;;  %v754_v32 = vld [vmem:[#allocation3 + $0x8] sm:$0xf] }
 0x269   :  { %vm3657_vm5 = vmand %vm4137_vm7, %vm4135_vm4  ;;  %v1182_v20 = vshrl.u32 %v1966_v56, 16  ;;  %v1185_v13 = vshll.u32 %v1966_v56, 16  ;;  %v1190_v43 = vshrl.u32 %v1967_v48, 16  ;;  %v1193_v46 = vshll.u32 %v1967_v48, 16  ;;  %2100 = vmatpush3.bf16.msra.mxu1 %v2186_v19  ;;  %v4159_v38 = vld [vmem:[#allocation22_spill] sm:$0xff] }
 0x26a   :  { %v1968_v44 = vcombine.low %v1166_v40, %v1166_v40  ;;  %v1394_v58 = vsel %vm1389_vm13, %v1337_v18, 0  ;;  %vm4141_vm8 = vcmp.ge.s32.totalorder %v2731_v35, 0  ;;  %vm4143_vm3 = vnez %v4142_v11  ;;  %vm792_vm13 = vmpackc.low %vm3657_vm5, %vm3657_vm5  ;;  %2101 = vmatprep.subr.bf16.mxu1 %v2187_v39  ;;  %v2189_v59 = vld [vmem:[%s3827_s13] sm:$0xff]  }
 0x26b   :  { %vm3675_vm12 = vmand %vm4143_vm3, %vm4141_vm8  ;;  %v1425_v1 = vor.u32 %v1423_v29, %v3663_v30  ;;  %v1184_v53 = vrot.slane %v1182_v20, 2  ;;  %v1187_v26 = vrot.slane %v1185_v13, 3  ;;  %v1974_v57 = vcombine.low %v1393_v23, %v1394_v58  ;;  %v2188_v23 = vld [vmem:[%s3821_s7 + $0x20] ss:$0 sps:$4 sm:$0xff]  }
 0x26c   :  { %v1192_v42 = vrot.slane %v1190_v43, 2  ;;  %v1195_v35 = vrot.slane %v1193_v46, 3  ;;  %v1199_v31 = vshrl.u32 %v1968_v44, 16  ;;  %v1202_v25 = vshll.u32 %v1968_v44, 16  ;;  %928 = vrot.lane.b32.xlu0 %v925_v37, %s2221_s2  ;;  %vm4153_vm4 = vmmov %vm4140_vm10 }
 0x26d   :  { %vm4146_vm1 = vcmp.ge.s32.totalorder %v2594_v0, 0  ;;  %vm4148_vm15 = vnez %v4147_v28  ;;  %v4152_v7 = vrot.slane %v4151_v15, 1  ;;  %v1188_v41 = vor.u32 %v1187_v26, %v1184_v53  ;;  %v4155_v0 = vld [vmem:[#allocation11_spill] sm:$0xff]  ;;  %vm793_vm3 = vmpackc.low %vm3675_vm12, %vm3675_vm12  ;;  %2102 = vmatpush3.bf16.msra.mxu1 %v2187_v39  ;;  %v1987_v39 = vld [vmem:[%s3822_s8] ss:$0 sm:$0xff] }
 0x26e   :  { %vm3687_vm14 = vmand %vm4148_vm15, %vm4146_vm1  ;;  %v1412_v45 = vshrl.u32 %v1974_v57, 16  ;;  %v1414_v10 = vshll.u32 %v1974_v57, 16  ;;  %vm4154_vm7 = vcmp.ge.s32.totalorder %v2601_v3, 0  ;;  %vm4156_vm10 = vnez %v4155_v0 }
 0x26f   :  { %v1430_v60 = vsel %vm4153_vm4, %v1425_v1, %v4152_v7  ;;  %vm3702_vm8 = vmand %vm4156_vm10, %vm4154_vm7  ;;  %v1196_v21 = vor.u32 %v1195_v35, %v1192_v42  ;;  %v1201_v54 = vrot.slane %v1199_v31, 2  ;;  %v1204_v22 = vrot.slane %v1202_v25, 3  ;;  %v1631_v25 = vld [vmem:[%s3824_s10] sm:$0xf] }
 0x270   :  { %1433 = vrot.lane.b32.xlu1 %v1430_v60, %s2222_s29  ;;  %v1475_v61 = vsel %vm1470_vm6, %v1442_v34, 0  ;;  %v1416_v3 = vrot.slane %v1414_v10, 1  ;;  %v1476_v24 = vsel %vm1471_vm9, %v1443_v27, 0  ;;  %v1473_v33 = vsel %vm3632_vm2, %v1440_v49, 0  ;;  %vm794_vm6 = vmpackc.low %vm3687_vm14, %vm3687_vm14  ;;  %v1988_v7 = vld [vmem:[%s3823_s9] ss:$0 sm:$0xff] }
 0x271   :  { %v1474_v4 = vsel %vm1469_vm0, %v1441_v8, 0  ;;  %v1197_v6 = vsel %vm1180_vm11, %v1188_v41, %v1196_v21  ;;  %v1205_v63 = vor.u32 %v1204_v22, %v1201_v54  ;;  %v1978_v2 = vcombine.low %v1475_v61, %v1476_v24  ;;  %vm795_vm9 = vmpackc.low %vm3702_vm8, %vm3702_vm8 }
 0x272   :  { %v1977_v14 = vcombine.low %v1473_v33, %v1474_v4  ;;  %1207 = vrot.lane.b32.xlu0 %v1197_v6, %s2223_s28  ;;  %v1417_v47 = vor.u32 %v1416_v3, %v1412_v45  ;;  %v4160_v17 = vcombine.low %v4159_v38, %v4159_v38  ;;  %vm812_vm2 = vcmask 64512   ;;  %vm4161_vm0 = vmmov %vm4153_vm4 }
 0x273   :  { %v1206_v55 = vsel %vm1180_vm11, %v1196_v21, %v1205_v63  ;;  %v1492_v29 = vrot.slane %v1978_v2, 1  ;;  %v796_v56 = vsel %vm792_vm13, %v752_v9, 0  ;;  %v797_v18 = vsel %vm793_vm3, %v753_v5, 0  ;;  %v4164_v63 = vld [vmem:[#allocation8_spill] sm:$0xff]  ;;  %v4166_v2 = vld [vmem:[#allocation9_spill] sm:$0xff] }
 0x274   :  { %v1494_v50 = vrot.slane %v4160_v17, 1  ;;  %1209 = vrot.lane.b32.xlu1 %v1206_v55, %s2223_s28  ;;  %v1955_v12 = vcombine.low %v796_v56, %v797_v18  ;;  %v798_v48 = vsel %vm794_vm6, %v754_v32, 0  ;;  %v799_v40 = vsel %vm795_vm9, %v755_v16, 0  ;;  %v2191_v16 = vld [vmem:[%s3830_s16 + $0x8] sm:$0xff]   ;;  %v1991_v55 = vld [vmem:[%s3825_s11] ss:$0 sm:$0xff] }
 0x275   :  { %v1422_v52 = vsel %vm4161_vm0, %v1417_v47, %v3663_v30  ;;  %v1491_v62 = vrot.slane %v1977_v14, 1  ;;  %v1956_v37 = vcombine.low %v798_v48, %v799_v40  ;;  %vm4162_vm11 = vcmask 1046528   ;;  %v2190_v14 = vld [vmem:[%s3830_s16] sm:$0xff]  }
 0x276   :  { %1431 = vrot.lane.b32.xlu0 %v1422_v52, %s2222_s29  ;;  %813 = vst.msk [vmem:[#allocation4] sm:$0xff] %vm812_vm2, %v1955_v12  ;;  %v1495_v20 = vsel %vm4162_vm11, %v1492_v29, %v1494_v50  ;;  %vm1550_vm5 = vcmask 1043456   ;;  %vm4163_vm12 = vmmov %vm4162_vm11  ;;  %vm932_vm13 = vcmask 130112   ;;  %vm1017_vm1 = vcmask 195712   ;;  %v1992_v18 = vld [vmem:[%s3826_s12] ss:$0 sm:$0xff] }
 0x277   :  { %814 = vst.msk [vmem:[#allocation4 + $0x8] sm:$0xff] %vm812_vm2, %v1956_v37  ;;  %2129 = vmatprep.subr.msk.bf16.mxu1 %vm1550_vm5, %v2188_v23  ;;  %v1552_v13 = vsel %vm1550_vm5, %v2188_v23, 0  ;;  %v1493_v34 = vsel %vm4163_vm12, %v1491_v62, %v1492_v29  ;;  %vm1098_vm15 = vcmask 261312   ;;  %vm1213_vm14 = vcmask 326912   ;;  %v1996_v29 = vld [vmem:[%s3828_s14] ss:$0 sm:$0xff] }
 0x278   :  { %1498 = vrot.lane.b32.xlu1 %v1495_v20, %s2224_s5  ;;  %2104 = vmatpush3.bf16.msra.mxu1 %v1552_v13  ;;  %vm1282_vm4 = vcmask 392512   ;;  %vm1333_vm7 = vcmask 458112   ;;  %vm1437_vm10 = vcmask 523712   ;;  %vm1502_vm8 = vcmask 589312   ;;  %v1997_v40 = vld [vmem:[%s3829_s15] ss:$0 sm:$0xff] }
 0x279   :  { %vm1543_vm3 = vcmask 588800   ;;  %2130 = vmatprep.subr.msk.bf16.mxu1 %vm1550_vm5, %v1631_v25  ;;  %v1639_v28 = vsel %vm1550_vm5, %v1631_v25, 0  ;;  %vm4165_vm6 = vcmask 130048   ;;  %v2225_v32 = vmov 0.0   ;;  %s2227_s14 = smov [#allocation5]  }
 0x27a   :  { %1496 = vrot.lane.b32.xlu0 %v1493_v34, %s2224_s5  ;;  %vm4167_vm9 = vmmov %vm4165_vm6  ;;  %vm2226_vm0 = vmmov 0   ;;  %vm1838_vm11 = vcmask 1041409   ;;  %s1904_s15 = sshll.u32 %s2227_s14, 4  ;;  %vm1896_vm5 = vcmask 33792   ;;  %s1905_s15 = int_to_ptr.vmem [resolvable:$true] %s1904_s15 }
 0x27b   :  { %s2192_s29 = scalar_lea.vmem %s1905_s15, 32  ;;  %p2197_p1 = scmp.lt.s32.totalorder %s1905_s15, %s1905_s15 }
 0x27c   :  { %p2193_p0 = scmp.ne.s32.totalorder %s1905_s15, %s2192_s29  ;;  %p2198_p2 = scmp.lt.s32.totalorder %s2192_s29, %s2192_s29 }
 0x27e   :  { %p2199_p3 = por %p2198_p2, %p2197_p1 }
 0x280   :  { %p2200_p4 = pnand %p2199_p3, %p2193_p0 }
 0x2c2   :  { %v1330_v30 = vpop.permute.xlu1 %1329 }
 0x2c5   :  { %v1328_v19 = vpop.permute.xlu0 %1327 }
 0x2cb   :  { %v1012_v43 = vpop.permute.xlu1 %1011 }
 0x2ce   :  { %v1093_v46 = vpop.permute.xlu0 %1092 }
 0x2cf   :  { %v1014_v44 = vpop.permute.xlu1 %1013 }
 0x2d2   :  { %v1277_v58 = vpop.permute.xlu0 %1276 }
 0x2d3   :  { %v1095_v27 = vpop.permute.xlu1 %1094 }
 0x2d7   :  { %v1279_v51 = vpop.permute.xlu1 %1278 }
 0x2da   :  { %v927_v11 = vpop.permute.xlu0 %926 }
 0x2db   :  { %933 = vst.msk [vmem:[#allocation4] sm:$0xff] %vm932_vm13, %v927_v11 }
 0x2dc   :  { %1018 = vst.msk [vmem:[#allocation4] sm:$0xff] %vm1017_vm1, %v1012_v43 }
 0x2dd   :  { %1099 = vst.msk [vmem:[#allocation4] sm:$0xff] %vm1098_vm15, %v1093_v46 }
 0x2de   :  { %v929_v1 = vpop.permute.xlu0 %928 }
 0x2df   :  { %934 = vst.msk [vmem:[#allocation4 + $0x8] sm:$0xff] %vm932_vm13, %v929_v1 }
 0x2e0   :  { %1019 = vst.msk [vmem:[#allocation4 + $0x8] sm:$0xff] %vm1017_vm1, %v1014_v44 }
 0x2e1   :  { %1100 = vst.msk [vmem:[#allocation4 + $0x8] sm:$0xff] %vm1098_vm15, %v1095_v27 }
 0x2e2   :  { %v1434_v53 = vpop.permute.xlu1 %1433 }
 0x2e4   :  { %v1208_v26 = vpop.permute.xlu0 %1207 }
 0x2e5   :  { %1214 = vst.msk [vmem:[#allocation4] sm:$0xff] %vm1213_vm14, %v1208_v26 }
 0x2e6   :  { %1283 = vst.msk [vmem:[#allocation4] sm:$0xff] %vm1282_vm4, %v1277_v58  ;;  %v1210_v57 = vpop.permute.xlu1 %1209 }
 0x2e7   :  { %1215 = vst.msk [vmem:[#allocation4 + $0x8] sm:$0xff] %vm1213_vm14, %v1210_v57 }
 0x2e8   :  { %1334 = vst.msk [vmem:[#allocation4] sm:$0xff] %vm1333_vm7, %v1328_v19  ;;  %v1432_v49 = vpop.permute.xlu0 %1431 }
 0x2e9   :  { %1284 = vst.msk [vmem:[#allocation4 + $0x8] sm:$0xff] %vm1282_vm4, %v1279_v51 }
 0x2ea   :  { %1438 = vst.msk [vmem:[#allocation4] sm:$0xff] %vm1437_vm10, %v1432_v49  ;;  %v1499_v8 = vpop.permute.xlu1 %1498 }
 0x2eb   :  { %1335 = vst.msk [vmem:[#allocation4 + $0x8] sm:$0xff] %vm1333_vm7, %v1330_v30 }
 0x2ec   :  { %1439 = vst.msk [vmem:[#allocation4 + $0x8] sm:$0xff] %vm1437_vm10, %v1434_v53  ;;  %v1497_v42 = vpop.permute.xlu0 %1496 }
 0x2ed   :  { %1504 = vst.msk [vmem:[#allocation4 + $0x8] sm:$0xff] %vm1502_vm8, %v1499_v8  ;;  %1503 = vst.msk [vmem:[#allocation4] sm:$0xff] %vm1502_vm8, %v1497_v42 }
 0x2f4   :  { %v1505_v35 = vld [vmem:[#allocation4] sm:$0xff]  ;;  %v1506_v31 = vld [vmem:[#allocation4 + $0x8] sm:$0xff] }
 0x2f5   :  { %2105 = vmatprep.mubr.msk.bf16.mxu1 %vm1543_vm3, %v1505_v35 }
 0x2f6   :  { %2106 = vmatmul.mubr.msk.bf16.vlgmr.msra.gmra.mrb[4].mxu1 %vm1543_vm3, %v1506_v31 }
 0x2f7   :  { %2110 = vmatpush3.bf16.msra.mxu1 %v1639_v28 }
 0x2f8   :  { %2115 = vmatprep.subr.bf16.mxu1 %v2189_v59 }
 0x3c9   :  { %v2107_v15 = vpop.f32.mrb[4].mxu1 }
 0x3ca   :  { %v1612_v60 = vmul.f32 %v2107_v15, %v1987_v39  ;;  %v1588_v41 = vpop.f32.mrb[5].mxu1 }
 0x3cb   :  { %v1610_v45 = vmul.f32 %v1987_v39, %v1588_v41  ;;  %v2108_v10 = vpop.f32.mrb[6].mxu1 }
 0x3cc   :  { %v1623_v0 = vadd.f32 %v1988_v7, %v1612_v60  ;;  %v1613_v36 = vmul.f32 %v2108_v10, %v1987_v39  ;;  %v1591_v21 = vpop.f32.mrb[7].mxu1 }
 0x3cd   :  { %v1621_v54 = vadd.f32 %v1988_v7, %v1610_v45  ;;  %v1611_v22 = vmul.f32 %v1987_v39, %v1591_v21 }
 0x3ce   :  { %v1624_v61 = vadd.f32 %v1988_v7, %v1613_v36  ;;  %v1627_v3 = vmax.f32 %v1623_v0, 0.0 }
 0x3cf   :  { %v1622_v9 = vadd.f32 %v1988_v7, %v1611_v22  ;;  %v1625_v33 = vmax.f32 %v1621_v54, 0.0 }
 0x3d0   :  { %v1628_v24 = vmax.f32 %v1624_v61, 0.0 }
 0x3d1   :  { %v1626_v4 = vmax.f32 %v1622_v9, 0.0 }
 0x3d2   :  { %v1630_v5 = vpack.c.bf16 %v1628_v24, %v1627_v3 }
 0x3d3   :  { %v1629_v6 = vpack.c.bf16 %v1626_v4, %v1625_v33 }
 0x3d5   :  { %2111 = vmatprep.mubr.msk.bf16.mxu1 %vm812_vm2, %v1629_v6 }
 0x3d6   :  { %2112 = vmatmul.mubr.msk.bf16.vlgmr.msra.gmra.mrb[8].mxu1 %vm812_vm2, %v1630_v5  ;;  %vm1799_vm2 = vcmask 261120  }
 0x3d7   :  { %2116 = vmatpush3.bf16.msra.mxu1 %v2189_v59  ;;  %2117 = vmatprep.mubr.msk.bf16.mxu1 %vm4165_vm6, %v4164_v63 }
 0x3d8   :  { %2121 = vmatprep.subr.bf16.mxu1 %v2225_v32 }
 0x3de   :  { %2118 = vmatmul.mubr.msk.bf16.vlgmr.msra.gmra.mrb[12].mxu1 %vm4167_vm9, %v4166_v2 }
 0x3df   :  { %2125 = vmatprep.mubr.msk.bf16.mxu1 %vm2226_vm0, %v2225_v32  ;;  %2122 = vmatpush3.bf16.msra.mxu1 %v2190_v14 }
 0x3e0   :  { %2123 = vmatprep.subr.bf16.mxu1 %v2225_v32  ;;  %v1998_v32 = vld [vmem:[%s3831_s17] ss:$0 sm:$0xff] }
 0x3e3   :  { %2124 = vmatpush3.bf16.msra.mxu1 %v2191_v16 }
 0x4a9   :  { %v2113_v47 = vpop.f32.mrb[8].mxu1 }
 0x4aa   :  { %v1675_v38 = vpop.f32.mrb[9].mxu1  ;;  %v1699_v56 = vmul.f32 %v2113_v47, %v1991_v55 }
 0x4ab   :  { %v2114_v17 = vpop.f32.mrb[10].mxu1  ;;  %v1697_v12 = vmul.f32 %v1991_v55, %v1675_v38 }
 0x4ac   :  { %v1678_v50 = vpop.f32.mrb[11].mxu1  ;;  %v1700_v23 = vmul.f32 %v2114_v17, %v1991_v55  ;;  %v1710_v34 = vadd.f32 %v1992_v18, %v1699_v56 }
 0x4ad   :  { %v1698_v37 = vmul.f32 %v1991_v55, %v1678_v50  ;;  %v1708_v46 = vadd.f32 %v1992_v18, %v1697_v12 }
 0x4ae   :  { %v1711_v27 = vadd.f32 %v1992_v18, %v1700_v23 }
 0x4af   :  { %v1709_v1 = vadd.f32 %v1992_v18, %v1698_v37 }
 0x4b1   :  { %v2119_v48 = vpop.f32.mrb[12].mxu1 }
 0x4b2   :  { %v1778_v52 = vmul.f32 %v2119_v48, %v1996_v29  ;;  %v1754_v62 = vpop.f32.mrb[13].mxu1 }
 0x4b3   :  { %v1776_v20 = vmul.f32 %v1996_v29, %v1754_v62  ;;  %v2120_v13 = vpop.f32.mrb[14].mxu1 }
 0x4b4   :  { %v1789_v30 = vadd.f32 %v1997_v40, %v1778_v52  ;;  %v1779_v19 = vmul.f32 %v2120_v13, %v1996_v29  ;;  %v1757_v43 = vpop.f32.mrb[15].mxu1 }
 0x4b5   :  { %v1787_v44 = vadd.f32 %v1997_v40, %v1776_v20  ;;  %v1777_v58 = vmul.f32 %v1996_v29, %v1757_v43 }
 0x4b6   :  { %v1793_v11 = vadd.f32 %v1789_v30, %v1710_v34  ;;  %v1790_v51 = vadd.f32 %v1997_v40, %v1779_v19 }
 0x4b7   :  { %v1791_v53 = vadd.f32 %v1787_v44, %v1708_v46  ;;  %v1788_v26 = vadd.f32 %v1997_v40, %v1777_v58 }
 0x4b8   :  { %v1797_v57 = vmax.f32 %v1793_v11, 0.0  ;;  %v1794_v49 = vadd.f32 %v1790_v51, %v1711_v27 }
 0x4b9   :  { %v1795_v8 = vmax.f32 %v1791_v53, 0.0  ;;  %v1792_v42 = vadd.f32 %v1788_v26, %v1709_v1 }
 0x4ba   :  { %v1798_v35 = vmax.f32 %v1794_v49, 0.0  ;;  %v1809_v25 = vsel %vm1799_vm2, %v1797_v57, 0.0 }
 0x4bb   :  { %v1796_v31 = vmax.f32 %v1792_v42, 0.0  ;;  %v1800_v59 = vsel %vm1799_vm2, %v1795_v8, 0.0 }
 0x4bc   :  { %v1810_v28 = vsel %vm1799_vm2, %v1798_v35, 0.0 }
 0x4bd   :  { %v1801_v39 = vsel %vm1799_vm2, %v1796_v31, 0.0  ;;  %v1811_v15 = vadd.f32 %v1810_v28, %v1809_v25 }
 0x4be   :  { %v1802_v7 = vadd.f32 %v1801_v39, %v1800_v59 }
 0x4bf   :  { %v1812_v60 = vrot.slane %v1811_v15, 4 }
 0x4c0   :  { %v1803_v41 = vrot.slane %v1802_v7, 4 }
 0x4c1   :  { %v1813_v45 = vadd.f32 %v1812_v60, %v1811_v15 }
 0x4c2   :  { %v1804_v10 = vadd.f32 %v1803_v41, %v1802_v7 }
 0x4c3   :  { %v1814_v0 = vrot.slane %v1813_v45, 2 }
 0x4c4   :  { %v1805_v36 = vrot.slane %v1804_v10, 2 }
 0x4c5   :  { %v1815_v21 = vadd.f32 %v1814_v0, %v1813_v45 }
 0x4c6   :  { %v1806_v54 = vadd.f32 %v1805_v36, %v1804_v10 }
 0x4c7   :  { %v1816_v22 = vrot.slane %v1815_v21, 1 }
 0x4c8   :  { %v1807_v61 = vrot.slane %v1806_v54, 1 }
 0x4c9   :  { %v1817_v9 = vadd.f32 %v1816_v22, %v1815_v21 }
 0x4ca   :  { %v1808_v3 = vadd.f32 %v1807_v61, %v1806_v54 }
 0x4cb   :  { %v1820_v24 = vmul.f32 0.0625, %v1817_v9 }
 0x4cc   :  { %v1819_v33 = vmul.f32 0.0625, %v1808_v3 }
 0x4cd   :  { %v1822_v4 = vpack.c.bf16 %v1820_v24, %v1820_v24 }
 0x4ce   :  { %v1821_v5 = vpack.c.bf16 %v1819_v33, %v1819_v33 }
 0x4cf   :  { %v1837_v6 = vunpack.c.l.b16 %v1822_v4 }
 0x4d0   :  { %v1836_v63 = vunpack.c.l.b16 %v1821_v5 }
 0x4d2   :  { %v1839_v2 = vsel %vm1838_vm11, %v1837_v6, %v1836_v63 }
 0x4d3   :  { %v1840_v14 = vpack.c.b16 %v1839_v2, %v1839_v2 }
 0x4d5   :  { %2126 = vmatmul.mubr.msk.bf16.vlgmr.msra.gmra.mrb[16].mxu1 %vm1799_vm2, %v1840_v14 }
 0x5a8   :  { %v1890_v16 = vpop.f32.mrb[16].mxu1 }
 0x5a9   :  { %v1891_v47 = vadd.f32 %v1998_v32, %v1890_v16  ;;  %v2127_v38 = vpop.f32.mrb[17].mxu1 }
 0x5aa   :  { %v1893_v17 = vpop.f32.mrb[18].mxu1 }
 0x5ab   :  { %v2128_v50 = vpop.f32.mrb[19].mxu1  ;;  %1897 = vst.msk [vmem:[#allocation5] sm:$0x3] %vm1896_vm5, %v1891_v47 }
 0x5ac   :  { %2203 = shalt.err (!%p2200_p4)
}
 0x5ad   :  { %s2204_s17 = scalar_lea.hbm %s3832_s18, 32 }
 0x5ae   :  { %p2205_p5 = scmp.ne.s32.totalorder %s3832_s18, %s2204_s17  ;;  %p2208_p6 = scmp.lt.u32.totalorder %s2204_s17, %s3832_s18 }
 0x5b0   :  { %p2210_p7 = pnand %p2208_p6, %p2205_p5 }
 0x5b2   :  { %2213 = shalt.err (!%p2210_p7)
}
 0x5b3   :  { %1907 = dma.vmem_to_hbm [thread:$0]  %s1905_s15, 32, %s3832_s18, [#allocation6]  }
 0x5b4   :  { %2214 = dma.done.wait [#allocation6], 32  }
 0x5b5   :  { %2215 = vsyncadd [#allocation6], 4294967264 }
 0x5b6   :  { %1911 = vsyncpa [#allocation6], 1 }

</bundles_post_ra>
